<compile_context>
chip_gen: v7x
topology: tpu7x:2x2x1
jax: 0.10.0
libtpu: 0.0.40
codegen_flags: <defaults>
</compile_context>

<pallas_src>
import numpy as np
import jax
import jax.numpy as jnp
from jax.experimental import pallas as pl
from jax.experimental.pallas import tpu as pltpu

_LANES = 128
_SUBLANES = 8
_N_STATS = 7                          # tp2, fp2, fn2, b_pos, b_neg, n_pos, n_neg
_TARGET_BLOCK_BYTES = 2 * 1024 * 1024 # per-input per-grid-step bytes (safe on v5e/v6e/v7x;
                                      # v6e-only deployments may raise to ~4 MiB)
_PAD_LOGIT = -30.0                    # sigmoid(-30) ~ 9.4e-14 -> dice pads underflow to ~0


def _round_up(v, m):
    return -(-v // m) * m


def _make_kernel(C, rt, eps, gamma):
    """Fused focal + dice statistics kernel for one (1, C, rt, 128) block."""

    def kernel(x_ref, y_ref, out_ref):
        n = pl.program_id(1)

        @pl.when(n == 0)
        def _zero():
            out_ref[...] = jnp.zeros_like(out_ref)

        # 0/1 fold matrix: row i selects source rows j with j % 8 == i, so
        # fold_mat @ s is the (rt,128)->(8,128) sublane fold done on the MXU
        # (exact: entries are 0.0 / 1.0).  Built from cheap iotas (few vregs).
        lane = jax.lax.broadcasted_iota(jnp.int32, (_SUBLANES, rt), 1)
        sub = jax.lax.broadcasted_iota(jnp.int32, (_SUBLANES, rt), 0)
        fold_mat = ((lane & (_SUBLANES - 1)) == sub).astype(jnp.float32)

        for c in range(C):
            x = x_ref[0, c].astype(jnp.float32)      # (rt, 128)
            y = y_ref[0, c].astype(jnp.float32)

            # sigmoid: exp on the EUP, approx reciprocal on the EUP, plus one
            # Newton step (3 VPU ops) so the relative error is ~2^-22 instead
            # of vrcp's ~2^-12 (keeps the tight test tolerance).  The clamp
            # avoids exp overflow -> inf -> NaN in the Newton step.
            e = jnp.exp(jnp.minimum(-x, 80.0))
            d = 1.0 + e
            r = pl.reciprocal(d, approx=True)
            p = r * (2.0 - d * r)                    # 0 < p <= 1 always

            pos = y == 1.0
            neg = y == 0.0
            pos_f = pos.astype(jnp.float32)
            neg_f = neg.astype(jnp.float32)

            # focal "base" without alpha (alpha is folded into the scalar
            # epilogue):  b = (1 - t)^gamma * log(t),
            #             t = clip(p if pos else 1 - p, eps, 1 - eps)
            q = jnp.where(pos, p, 1.0 - p)
            t = jnp.clip(q, eps, 1.0 - eps)
            w = 1.0 - t
            wg = w * w if gamma == 2 else w ** gamma
            b = wg * jnp.log(t)

            tp = p * y
            fp = p - tp                              # == p * (1 - y)
            fn = y - tp                              # == (1 - p) * y

            def acc(i, s, c=c):
                # MXU fold to (8,128), then one vreg RMW on the VMEM-resident
                # lane-dense output accumulator (per-stat to keep live vregs low).
                out_ref[0, i * C + c] += jnp.dot(
                    fold_mat, s, preferred_element_type=jnp.float32)

            acc(0, tp * tp)
            acc(1, fp * fp)
            acc(2, fn * fn)
            acc(3, b * pos_f)
            acc(4, b * neg_f)
            acc(5, pos_f)
            acc(6, neg_f)

    return kernel


def focal_and_dice_loss(logits, targets, *, alpha=(0.25, 0.75), gamma=2,
                        weight_focal=0.75, weight_dice=0.25,
                        focal_smooth=1e-6, dice_smooth=1.0,
                        block_rows=None, block_bytes=_TARGET_BLOCK_BYTES):
    """FocalAndDice forward pass (loss_mask=None path) via a single Pallas kernel."""
    assert logits.shape == targets.shape, "logits/targets must have the same shape"
    assert logits.ndim >= 3, "expected (B, C, spatial...)"
    N, C = int(logits.shape[0]), int(logits.shape[1])
    hw = 1
    for d in logits.shape[2:]:
        hw *= int(d)

    # free contiguous reshapes — inputs stay in native dtype (cast in-kernel),
    # so callers on v5e can pass bf16 and halve the HBM traffic.
    x3 = logits.reshape(N, C, hw)
    y3 = targets.reshape(N, C, hw)

    # ---- tiling: rt rows of 128 lanes per block, rt always a multiple of 8 ----
    S_raw = -(-hw // _LANES)
    S8 = _round_up(max(S_raw, 1), _SUBLANES)
    itemsize = jnp.dtype(logits.dtype).itemsize
    if block_rows is not None:
        rt = max(_SUBLANES, (min(int(block_rows), S8) // _SUBLANES) * _SUBLANES)
    else:
        rt = max(_SUBLANES,
                 (block_bytes // (C * _LANES * itemsize)) // _SUBLANES * _SUBLANES)
        rt = min(rt, S8)
        # keep >= 2 spatial tiles so the "parallel" axis feeds both v7x cores
        if rt >= S8 and S8 >= 2 * _SUBLANES:
            rt = _round_up(S8 // 2, _SUBLANES)
    K = -(-S8 // rt)
    S_pad = K * rt
    hw_pad = S_pad * _LANES
    n_pad = hw_pad - hw

    if n_pad:
        # Pad to exact tile multiples instead of masking in-kernel:
        #   x_pad = -30 -> p ~ 1e-13, so tp^2/fp^2/fn^2 pad terms are ~1e-26 (ignored)
        #   y_pad = 0   -> pad pixels count as negatives; their focal term is
        #                  -(1e-6)^2*log(1-1e-6) ~ 1e-18 per pixel (ignored) and
        #                  the exact integer over-count of num_neg is removed in
        #                  the epilogue.
        x3 = jnp.pad(x3, ((0, 0), (0, 0), (0, n_pad)), constant_values=_PAD_LOGIT)
        y3 = jnp.pad(y3, ((0, 0), (0, 0), (0, n_pad)))

    x4 = x3.reshape(N, C, S_pad, _LANES)
    y4 = y3.reshape(N, C, S_pad, _LANES)

    kernel = _make_kernel(C=C, rt=rt, eps=float(focal_smooth), gamma=gamma)

    in_block = pl.BlockSpec((1, C, rt, _LANES), lambda k, n: (n, 0, k, 0))
    out_block = pl.BlockSpec((1, _N_STATS * C, _SUBLANES, _LANES),
                             lambda k, n: (k, 0, 0, 0))

    stats = pl.pallas_call(
        kernel,
        out_shape=jax.ShapeDtypeStruct((K, _N_STATS * C, _SUBLANES, _LANES),
                                       jnp.float32),
        grid_spec=pltpu.PrefetchScalarGridSpec(
            num_scalar_prefetch=0,
            grid=(K, N),
            in_specs=[in_block, in_block],
            out_specs=out_block,
        ),
        compiler_params=pltpu.CompilerParams(
            dimension_semantics=("parallel", "arbitrary")),
    )(x4, y4)

    # ---- tiny epilogue in plain JAX (O(K * 7 * C * 1024) floats) ----
    s = jnp.sum(stats, axis=(0, 2, 3)).reshape(_N_STATS, C)     # (7, C)
    tp_c, fp_c, fn_c = s[0], s[1], s[2]
    pos_loss = -float(alpha[0]) * jnp.sum(s[3])
    neg_loss = -float(alpha[1]) * jnp.sum(s[4])
    num_pos = jnp.sum(s[5])
    num_neg = jnp.sum(s[6])
    if n_pad:
        # exact integer correction of the padded-pixel negative count
        num_neg = num_neg - jnp.float32(N * C * n_pad)

    focal = jnp.where(num_pos == 0.0, neg_loss,
                      pos_loss / num_pos + neg_loss / num_neg)
    dc = (2.0 * tp_c + dice_smooth) / (2.0 * tp_c + fp_c + fn_c + dice_smooth)
    dice = -jnp.mean(dc)
    return weight_focal * focal + weight_dice * dice


class FocalAndDice:
    """JAX/Pallas port of the PyTorch FocalAndDice loss (forward only)."""
    __name__ = "FocalAndDice"

    def __init__(self, alpha=None, weight_focal=0.75, weight_dice=0.25, gamma=2):
        if alpha is None:
            alpha = (0.25, 0.75)   # BinaryFocalLoss default when alpha is None
        self.alpha = (float(alpha[0]), float(alpha[1]))
        self.weight_focal = float(weight_focal)
        self.weight_dice = float(weight_dice)
        self.gamma = gamma

    def __call__(self, input, target, loss_mask=None):
        if loss_mask is not None:
            # TODO(synk): loss_mask != None variant not implemented.
            raise NotImplementedError("loss_mask is not supported")
        loss = focal_and_dice_loss(input, target, alpha=self.alpha,
                                   gamma=self.gamma,
                                   weight_focal=self.weight_focal,
                                   weight_dice=self.weight_dice)
        return jnp.mean(loss)   # mean of a scalar, mirrors `loss.mean()`


def _ref_focal_and_dice(x, y, alpha=(0.25, 0.75), gamma=2,
                        weight_focal=0.75, weight_dice=0.25):
    """Pure-JAX reference that mirrors the PyTorch module exactly."""
    x = x.astype(jnp.float32)
    y = y.astype(jnp.float32)
    p = 1.0 / (1.0 + jnp.exp(-x))
    # BinaryFocalLoss
    pc = jnp.clip(p, 1e-6, 1.0 - 1e-6)
    pos = (y == 1.0).astype(jnp.float32)
    neg = (y == 0.0).astype(jnp.float32)
    pos_loss = jnp.sum(-alpha[0] * (1.0 - pc) ** gamma * jnp.log(pc) * pos)
    neg_loss = jnp.sum(-alpha[1] * pc ** gamma * jnp.log(1.0 - pc) * neg)
    num_pos = jnp.sum(pos)
    num_neg = jnp.sum(neg)
    focal = jnp.where(num_pos == 0, neg_loss,
                      pos_loss / num_pos + neg_loss / num_neg)
    # SoftDiceLoss(apply_nonlin=sigmoid, square=True, batch_dice=True, smooth=1)
    axes = (0,) + tuple(range(2, x.ndim))
    tp = jnp.sum((p * y) ** 2, axis=axes)
    fp = jnp.sum((p * (1.0 - y)) ** 2, axis=axes)
    fn = jnp.sum(((1.0 - p) * y) ** 2, axis=axes)
    dc = (2.0 * tp + 1.0) / (2.0 * tp + fp + fn + 1.0)
    dice = -jnp.mean(dc)
    return weight_focal * focal + weight_dice * dice


if __name__ == "__main__":
    key = jax.random.PRNGKey(0)
    loss_fn = FocalAndDice()

    cases = [
        ((2, 4, 16, 16), jnp.float32, None),   # single tile, spatial pad + num_neg fix
        ((2, 4, 64, 64), jnp.float32, None),   # K=2 spatial tiles, no padding
        ((2, 4, 64, 64), jnp.float32, 8),      # forced small tiles (K=4)
        ((2, 3, 20, 20), jnp.float32, None),   # ragged spatial (H*W % 128 != 0)
        ((2, 4, 64, 64), jnp.bfloat16, None),  # low-precision input pass-through
    ]

    for shape, dtype, block_rows in cases:
        key, k1, k2 = jax.random.split(key, 3)
        logits = jax.random.normal(k1, shape, dtype=jnp.float32).astype(dtype)
        targets = (jax.random.uniform(k2, shape) > 0.5).astype(dtype)

        out = jax.block_until_ready(
            focal_and_dice_loss(logits, targets, block_rows=block_rows))
        ref = _ref_focal_and_dice(logits, targets)
        assert jnp.allclose(out, ref, rtol=3e-4, atol=3e-5), (shape, dtype, out, ref)

    # module-style call check
    key, k1, k2 = jax.random.split(key, 3)
    logits = jax.random.normal(k1, (2, 4, 16, 16), dtype=jnp.float32)
    targets = (jax.random.uniform(k2, (2, 4, 16, 16)) > 0.5).astype(jnp.float32)
    out_mod = jax.block_until_ready(loss_fn(logits, targets))
    ref = _ref_focal_and_dice(logits, targets)
    assert jnp.allclose(out_mod, ref, rtol=3e-4, atol=3e-5), (out_mod, ref)

    print("KERNEL_OK")
</pallas_src>

<mosaic_0001>
module attributes {stable_mosaic.version = 11 : i64} {
  func.func @kernel(%arg0: i32, %arg1: i32, %arg2: memref<1x4x8x128xf32, #tpu.memory_space<vmem>>, %arg3: memref<1x4x8x128xf32, #tpu.memory_space<vmem>>, %arg4: memref<1x28x8x128xf32, #tpu.memory_space<vmem>>) attributes {dimension_semantics = [#tpu.dimension_semantics<parallel>, #tpu.dimension_semantics<arbitrary>], iteration_bounds = array<i64: 1, 2>, scalar_prefetch = 0 : i64, scratch_operands = 0 : i64, tpu.core_type = #tpu.core_type<tc>, window_params = [{transform_indices = @transform_0, window_bounds = array<i64: 1, 4, 8, 128>}, {transform_indices = @transform_1, window_bounds = array<i64: 1, 4, 8, 128>}, {transform_indices = @transform_2, window_bounds = array<i64: 1, 28, 8, 128>}]} {
    %c0_i32 = arith.constant 0 : i32
    %0 = arith.cmpi eq, %arg1, %c0_i32 : i32
    %1 = arith.extui %0 : i1 to i32
    %c0_i32_0 = arith.constant 0 : i32
    %2 = arith.cmpi ne, %1, %c0_i32_0 : i32
    scf.if %2 {
      %cst_296 = arith.constant 0.000000e+00 : f32
      %382 = vector.broadcast %cst_296 : f32 to vector<1x28x8x128xf32>
      %c0_297 = arith.constant 0 : index
      %c0_298 = arith.constant 0 : index
      %c0_299 = arith.constant 0 : index
      %c0_300 = arith.constant 0 : index
      %383 = vector.load %arg4[%c0_297, %c0_298, %c0_299, %c0_300] : memref<1x28x8x128xf32, #tpu.memory_space<vmem>>, vector<1x28x8x128xf32>
      tpu.vector_store %arg4[%c0_297, %c0_298, %c0_299, %c0_300], %382 {strides = array<i32>} : memref<1x28x8x128xf32, #tpu.memory_space<vmem>>, vector<1x28x8x128xf32>,
    } else {
    }
    %3 = tpu.iota {dimensions = array<i32: 1>} : vector<8x8xi32>
    %4 = tpu.iota {dimensions = array<i32: 0>} : vector<8x8xi32>
    %c7_i32 = arith.constant 7 : i32
    %5 = vector.broadcast %c7_i32 : i32 to vector<8x8xi32>
    %6 = arith.andi %3, %5 : vector<8x8xi32>
    %7 = arith.cmpi eq, %6, %4 : vector<8x8xi32>
    %8 = arith.extui %7 : vector<8x8xi1> to vector<8x8xi32>
    %9 = arith.sitofp %8 : vector<8x8xi32> to vector<8x8xf32>
    %c0 = arith.constant 0 : index
    %c0_1 = arith.constant 0 : index
    %c0_2 = arith.constant 0 : index
    %c0_3 = arith.constant 0 : index
    %10 = vector.load %arg2[%c0, %c0_1, %c0_2, %c0_3] : memref<1x4x8x128xf32, #tpu.memory_space<vmem>>, vector<1x1x8x128xf32>
    %11 = vector.shape_cast %10 : vector<1x1x8x128xf32> to vector<8x128xf32>
    %c0_4 = arith.constant 0 : index
    %c0_5 = arith.constant 0 : index
    %c0_6 = arith.constant 0 : index
    %c0_7 = arith.constant 0 : index
    %12 = vector.load %arg3[%c0_4, %c0_5, %c0_6, %c0_7] : memref<1x4x8x128xf32, #tpu.memory_space<vmem>>, vector<1x1x8x128xf32>
    %13 = vector.shape_cast %12 : vector<1x1x8x128xf32> to vector<8x128xf32>
    %cst = arith.constant 0.000000e+00 : f32
    %14 = vector.broadcast %cst : f32 to vector<8x128xf32>
    %15 = arith.subf %14, %11 : vector<8x128xf32>
    %cst_8 = arith.constant 8.000000e+01 : f32
    %16 = vector.broadcast %cst_8 : f32 to vector<8x128xf32>
    %17 = arith.minimumf %15, %16 : vector<8x128xf32>
    %18 = math.exp %17 : vector<8x128xf32>
    %cst_9 = arith.constant 1.000000e+00 : f32
    %19 = vector.broadcast %cst_9 : f32 to vector<8x128xf32>
    %20 = arith.addf %19, %18 : vector<8x128xf32>
    %21 = tpu.reciprocal %20 {approx = true} : vector<8x128xf32> -> vector<8x128xf32>
    %22 = arith.mulf %20, %21 : vector<8x128xf32>
    %cst_10 = arith.constant 2.000000e+00 : f32
    %23 = vector.broadcast %cst_10 : f32 to vector<8x128xf32>
    %24 = arith.subf %23, %22 : vector<8x128xf32>
    %25 = arith.mulf %21, %24 : vector<8x128xf32>
    %cst_11 = arith.constant 1.000000e+00 : f32
    %26 = vector.broadcast %cst_11 : f32 to vector<8x128xf32>
    %27 = arith.cmpf oeq, %13, %26 : vector<8x128xf32>
    %cst_12 = arith.constant 0.000000e+00 : f32
    %28 = vector.broadcast %cst_12 : f32 to vector<8x128xf32>
    %29 = arith.cmpf oeq, %13, %28 : vector<8x128xf32>
    %30 = arith.extui %27 : vector<8x128xi1> to vector<8x128xi32>
    %31 = arith.sitofp %30 : vector<8x128xi32> to vector<8x128xf32>
    %32 = arith.extui %29 : vector<8x128xi1> to vector<8x128xi32>
    %33 = arith.sitofp %32 : vector<8x128xi32> to vector<8x128xf32>
    %cst_13 = arith.constant 1.000000e+00 : f32
    %34 = vector.broadcast %cst_13 : f32 to vector<8x128xf32>
    %35 = arith.subf %34, %25 : vector<8x128xf32>
    %36 = arith.select %27, %25, %35 : vector<8x128xi1>, vector<8x128xf32>
    %cst_14 = arith.constant 9.99999997E-7 : f32
    %cst_15 = arith.constant 0.999998986 : f32
    %37 = vector.broadcast %cst_14 : f32 to vector<8x128xf32>
    %38 = arith.maximumf %37, %36 : vector<8x128xf32>
    %39 = vector.broadcast %cst_15 : f32 to vector<8x128xf32>
    %40 = arith.minimumf %39, %38 : vector<8x128xf32>
    %cst_16 = arith.constant 1.000000e+00 : f32
    %41 = vector.broadcast %cst_16 : f32 to vector<8x128xf32>
    %42 = arith.subf %41, %40 : vector<8x128xf32>
    %43 = arith.mulf %42, %42 : vector<8x128xf32>
    %44 = math.log %40 : vector<8x128xf32>
    %45 = arith.mulf %43, %44 : vector<8x128xf32>
    %46 = arith.mulf %25, %13 : vector<8x128xf32>
    %47 = arith.subf %25, %46 : vector<8x128xf32>
    %48 = arith.subf %13, %46 : vector<8x128xf32>
    %49 = arith.mulf %46, %46 : vector<8x128xf32>
    %c0_17 = arith.constant 0 : index
    %c0_18 = arith.constant 0 : index
    %c0_19 = arith.constant 0 : index
    %c0_20 = arith.constant 0 : index
    %50 = vector.load %arg4[%c0_17, %c0_18, %c0_19, %c0_20] : memref<1x28x8x128xf32, #tpu.memory_space<vmem>>, vector<1x1x8x128xf32>
    %51 = vector.shape_cast %50 : vector<1x1x8x128xf32> to vector<8x128xf32>
    %cst_21 = arith.constant dense<0.000000e+00> : vector<8x128xf32>
    %52 = tpu.matmul %9, %49, %cst_21 {dimension_numbers = #tpu.dot_dimension_numbers<[1], [0], [0], [1], [0, 0, 1, 1], [], []>} : vector<8x8xf32>, vector<8x128xf32>, vector<8x128xf32> -> vector<8x128xf32>
    %53 = arith.addf %51, %52 : vector<8x128xf32>
    %c0_22 = arith.constant 0 : index
    %c0_23 = arith.constant 0 : index
    %c0_24 = arith.constant 0 : index
    %c0_25 = arith.constant 0 : index
    %54 = vector.load %arg4[%c0_22, %c0_23, %c0_24, %c0_25] : memref<1x28x8x128xf32, #tpu.memory_space<vmem>>, vector<1x1x8x128xf32>
    %55 = vector.shape_cast %54 : vector<1x1x8x128xf32> to vector<8x128xf32>
    %56 = vector.shape_cast %53 : vector<8x128xf32> to vector<1x1x8x128xf32>
    tpu.vector_store %arg4[%c0_22, %c0_23, %c0_24, %c0_25], %56 {strides = array<i32>} : memref<1x28x8x128xf32, #tpu.memory_space<vmem>>, vector<1x1x8x128xf32>,
    %57 = arith.mulf %47, %47 : vector<8x128xf32>
    %c0_26 = arith.constant 0 : index
    %c4 = arith.constant 4 : index
    %c0_27 = arith.constant 0 : index
    %c0_28 = arith.constant 0 : index
    %58 = vector.load %arg4[%c0_26, %c4, %c0_27, %c0_28] : memref<1x28x8x128xf32, #tpu.memory_space<vmem>>, vector<1x1x8x128xf32>
    %59 = vector.shape_cast %58 : vector<1x1x8x128xf32> to vector<8x128xf32>
    %cst_29 = arith.constant dense<0.000000e+00> : vector<8x128xf32>
    %60 = tpu.matmul %9, %57, %cst_29 {dimension_numbers = #tpu.dot_dimension_numbers<[1], [0], [0], [1], [0, 0, 1, 1], [], []>} : vector<8x8xf32>, vector<8x128xf32>, vector<8x128xf32> -> vector<8x128xf32>
    %61 = arith.addf %59, %60 : vector<8x128xf32>
    %c0_30 = arith.constant 0 : index
    %c4_31 = arith.constant 4 : index
    %c0_32 = arith.constant 0 : index
    %c0_33 = arith.constant 0 : index
    %62 = vector.load %arg4[%c0_30, %c4_31, %c0_32, %c0_33] : memref<1x28x8x128xf32, #tpu.memory_space<vmem>>, vector<1x1x8x128xf32>
    %63 = vector.shape_cast %62 : vector<1x1x8x128xf32> to vector<8x128xf32>
    %64 = vector.shape_cast %61 : vector<8x128xf32> to vector<1x1x8x128xf32>
    tpu.vector_store %arg4[%c0_30, %c4_31, %c0_32, %c0_33], %64 {strides = array<i32>} : memref<1x28x8x128xf32, #tpu.memory_space<vmem>>, vector<1x1x8x128xf32>,
    %65 = arith.mulf %48, %48 : vector<8x128xf32>
    %c0_34 = arith.constant 0 : index
    %c8 = arith.constant 8 : index
    %c0_35 = arith.constant 0 : index
    %c0_36 = arith.constant 0 : index
    %66 = vector.load %arg4[%c0_34, %c8, %c0_35, %c0_36] : memref<1x28x8x128xf32, #tpu.memory_space<vmem>>, vector<1x1x8x128xf32>
    %67 = vector.shape_cast %66 : vector<1x1x8x128xf32> to vector<8x128xf32>
    %cst_37 = arith.constant dense<0.000000e+00> : vector<8x128xf32>
    %68 = tpu.matmul %9, %65, %cst_37 {dimension_numbers = #tpu.dot_dimension_numbers<[1], [0], [0], [1], [0, 0, 1, 1], [], []>} : vector<8x8xf32>, vector<8x128xf32>, vector<8x128xf32> -> vector<8x128xf32>
    %69 = arith.addf %67, %68 : vector<8x128xf32>
    %c0_38 = arith.constant 0 : index
    %c8_39 = arith.constant 8 : index
    %c0_40 = arith.constant 0 : index
    %c0_41 = arith.constant 0 : index
    %70 = vector.load %arg4[%c0_38, %c8_39, %c0_40, %c0_41] : memref<1x28x8x128xf32, #tpu.memory_space<vmem>>, vector<1x1x8x128xf32>
    %71 = vector.shape_cast %70 : vector<1x1x8x128xf32> to vector<8x128xf32>
    %72 = vector.shape_cast %69 : vector<8x128xf32> to vector<1x1x8x128xf32>
    tpu.vector_store %arg4[%c0_38, %c8_39, %c0_40, %c0_41], %72 {strides = array<i32>} : memref<1x28x8x128xf32, #tpu.memory_space<vmem>>, vector<1x1x8x128xf32>,
    %73 = arith.mulf %45, %31 : vector<8x128xf32>
    %c0_42 = arith.constant 0 : index
    %c12 = arith.constant 12 : index
    %c0_43 = arith.constant 0 : index
    %c0_44 = arith.constant 0 : index
    %74 = vector.load %arg4[%c0_42, %c12, %c0_43, %c0_44] : memref<1x28x8x128xf32, #tpu.memory_space<vmem>>, vector<1x1x8x128xf32>
    %75 = vector.shape_cast %74 : vector<1x1x8x128xf32> to vector<8x128xf32>
    %cst_45 = arith.constant dense<0.000000e+00> : vector<8x128xf32>
    %76 = tpu.matmul %9, %73, %cst_45 {dimension_numbers = #tpu.dot_dimension_numbers<[1], [0], [0], [1], [0, 0, 1, 1], [], []>} : vector<8x8xf32>, vector<8x128xf32>, vector<8x128xf32> -> vector<8x128xf32>
    %77 = arith.addf %75, %76 : vector<8x128xf32>
    %c0_46 = arith.constant 0 : index
    %c12_47 = arith.constant 12 : index
    %c0_48 = arith.constant 0 : index
    %c0_49 = arith.constant 0 : index
    %78 = vector.load %arg4[%c0_46, %c12_47, %c0_48, %c0_49] : memref<1x28x8x128xf32, #tpu.memory_space<vmem>>, vector<1x1x8x128xf32>
    %79 = vector.shape_cast %78 : vector<1x1x8x128xf32> to vector<8x128xf32>
    %80 = vector.shape_cast %77 : vector<8x128xf32> to vector<1x1x8x128xf32>
    tpu.vector_store %arg4[%c0_46, %c12_47, %c0_48, %c0_49], %80 {strides = array<i32>} : memref<1x28x8x128xf32, #tpu.memory_space<vmem>>, vector<1x1x8x128xf32>,
    %81 = arith.mulf %45, %33 : vector<8x128xf32>
    %c0_50 = arith.constant 0 : index
    %c16 = arith.constant 16 : index
    %c0_51 = arith.constant 0 : index
    %c0_52 = arith.constant 0 : index
    %82 = vector.load %arg4[%c0_50, %c16, %c0_51, %c0_52] : memref<1x28x8x128xf32, #tpu.memory_space<vmem>>, vector<1x1x8x128xf32>
    %83 = vector.shape_cast %82 : vector<1x1x8x128xf32> to vector<8x128xf32>
    %cst_53 = arith.constant dense<0.000000e+00> : vector<8x128xf32>
    %84 = tpu.matmul %9, %81, %cst_53 {dimension_numbers = #tpu.dot_dimension_numbers<[1], [0], [0], [1], [0, 0, 1, 1], [], []>} : vector<8x8xf32>, vector<8x128xf32>, vector<8x128xf32> -> vector<8x128xf32>
    %85 = arith.addf %83, %84 : vector<8x128xf32>
    %c0_54 = arith.constant 0 : index
    %c16_55 = arith.constant 16 : index
    %c0_56 = arith.constant 0 : index
    %c0_57 = arith.constant 0 : index
    %86 = vector.load %arg4[%c0_54, %c16_55, %c0_56, %c0_57] : memref<1x28x8x128xf32, #tpu.memory_space<vmem>>, vector<1x1x8x128xf32>
    %87 = vector.shape_cast %86 : vector<1x1x8x128xf32> to vector<8x128xf32>
    %88 = vector.shape_cast %85 : vector<8x128xf32> to vector<1x1x8x128xf32>
    tpu.vector_store %arg4[%c0_54, %c16_55, %c0_56, %c0_57], %88 {strides = array<i32>} : memref<1x28x8x128xf32, #tpu.memory_space<vmem>>, vector<1x1x8x128xf32>,
    %c0_58 = arith.constant 0 : index
    %c20 = arith.constant 20 : index
    %c0_59 = arith.constant 0 : index
    %c0_60 = arith.constant 0 : index
    %89 = vector.load %arg4[%c0_58, %c20, %c0_59, %c0_60] : memref<1x28x8x128xf32, #tpu.memory_space<vmem>>, vector<1x1x8x128xf32>
    %90 = vector.shape_cast %89 : vector<1x1x8x128xf32> to vector<8x128xf32>
    %cst_61 = arith.constant dense<0.000000e+00> : vector<8x128xf32>
    %91 = tpu.matmul %9, %31, %cst_61 {dimension_numbers = #tpu.dot_dimension_numbers<[1], [0], [0], [1], [0, 0, 1, 1], [], []>} : vector<8x8xf32>, vector<8x128xf32>, vector<8x128xf32> -> vector<8x128xf32>
    %92 = arith.addf %90, %91 : vector<8x128xf32>
    %c0_62 = arith.constant 0 : index
    %c20_63 = arith.constant 20 : index
    %c0_64 = arith.constant 0 : index
    %c0_65 = arith.constant 0 : index
    %93 = vector.load %arg4[%c0_62, %c20_63, %c0_64, %c0_65] : memref<1x28x8x128xf32, #tpu.memory_space<vmem>>, vector<1x1x8x128xf32>
    %94 = vector.shape_cast %93 : vector<1x1x8x128xf32> to vector<8x128xf32>
    %95 = vector.shape_cast %92 : vector<8x128xf32> to vector<1x1x8x128xf32>
    tpu.vector_store %arg4[%c0_62, %c20_63, %c0_64, %c0_65], %95 {strides = array<i32>} : memref<1x28x8x128xf32, #tpu.memory_space<vmem>>, vector<1x1x8x128xf32>,
    %c0_66 = arith.constant 0 : index
    %c24 = arith.constant 24 : index
    %c0_67 = arith.constant 0 : index
    %c0_68 = arith.constant 0 : index
    %96 = vector.load %arg4[%c0_66, %c24, %c0_67, %c0_68] : memref<1x28x8x128xf32, #tpu.memory_space<vmem>>, vector<1x1x8x128xf32>
    %97 = vector.shape_cast %96 : vector<1x1x8x128xf32> to vector<8x128xf32>
    %cst_69 = arith.constant dense<0.000000e+00> : vector<8x128xf32>
    %98 = tpu.matmul %9, %33, %cst_69 {dimension_numbers = #tpu.dot_dimension_numbers<[1], [0], [0], [1], [0, 0, 1, 1], [], []>} : vector<8x8xf32>, vector<8x128xf32>, vector<8x128xf32> -> vector<8x128xf32>
    %99 = arith.addf %97, %98 : vector<8x128xf32>
    %c0_70 = arith.constant 0 : index
    %c24_71 = arith.constant 24 : index
    %c0_72 = arith.constant 0 : index
    %c0_73 = arith.constant 0 : index
    %100 = vector.load %arg4[%c0_70, %c24_71, %c0_72, %c0_73] : memref<1x28x8x128xf32, #tpu.memory_space<vmem>>, vector<1x1x8x128xf32>
    %101 = vector.shape_cast %100 : vector<1x1x8x128xf32> to vector<8x128xf32>
    %102 = vector.shape_cast %99 : vector<8x128xf32> to vector<1x1x8x128xf32>
    tpu.vector_store %arg4[%c0_70, %c24_71, %c0_72, %c0_73], %102 {strides = array<i32>} : memref<1x28x8x128xf32, #tpu.memory_space<vmem>>, vector<1x1x8x128xf32>,
    %c0_74 = arith.constant 0 : index
    %c1 = arith.constant 1 : index
    %c0_75 = arith.constant 0 : index
    %c0_76 = arith.constant 0 : index
    %103 = vector.load %arg2[%c0_74, %c1, %c0_75, %c0_76] : memref<1x4x8x128xf32, #tpu.memory_space<vmem>>, vector<1x1x8x128xf32>
    %104 = vector.shape_cast %103 : vector<1x1x8x128xf32> to vector<8x128xf32>
    %c0_77 = arith.constant 0 : index
    %c1_78 = arith.constant 1 : index
    %c0_79 = arith.constant 0 : index
    %c0_80 = arith.constant 0 : index
    %105 = vector.load %arg3[%c0_77, %c1_78, %c0_79, %c0_80] : memref<1x4x8x128xf32, #tpu.memory_space<vmem>>, vector<1x1x8x128xf32>
    %106 = vector.shape_cast %105 : vector<1x1x8x128xf32> to vector<8x128xf32>
    %cst_81 = arith.constant 0.000000e+00 : f32
    %107 = vector.broadcast %cst_81 : f32 to vector<8x128xf32>
    %108 = arith.subf %107, %104 : vector<8x128xf32>
    %cst_82 = arith.constant 8.000000e+01 : f32
    %109 = vector.broadcast %cst_82 : f32 to vector<8x128xf32>
    %110 = arith.minimumf %108, %109 : vector<8x128xf32>
    %111 = math.exp %110 : vector<8x128xf32>
    %cst_83 = arith.constant 1.000000e+00 : f32
    %112 = vector.broadcast %cst_83 : f32 to vector<8x128xf32>
    %113 = arith.addf %112, %111 : vector<8x128xf32>
    %114 = tpu.reciprocal %113 {approx = true} : vector<8x128xf32> -> vector<8x128xf32>
    %115 = arith.mulf %113, %114 : vector<8x128xf32>
    %cst_84 = arith.constant 2.000000e+00 : f32
    %116 = vector.broadcast %cst_84 : f32 to vector<8x128xf32>
    %117 = arith.subf %116, %115 : vector<8x128xf32>
    %118 = arith.mulf %114, %117 : vector<8x128xf32>
    %cst_85 = arith.constant 1.000000e+00 : f32
    %119 = vector.broadcast %cst_85 : f32 to vector<8x128xf32>
    %120 = arith.cmpf oeq, %106, %119 : vector<8x128xf32>
    %cst_86 = arith.constant 0.000000e+00 : f32
    %121 = vector.broadcast %cst_86 : f32 to vector<8x128xf32>
    %122 = arith.cmpf oeq, %106, %121 : vector<8x128xf32>
    %123 = arith.extui %120 : vector<8x128xi1> to vector<8x128xi32>
    %124 = arith.sitofp %123 : vector<8x128xi32> to vector<8x128xf32>
    %125 = arith.extui %122 : vector<8x128xi1> to vector<8x128xi32>
    %126 = arith.sitofp %125 : vector<8x128xi32> to vector<8x128xf32>
    %cst_87 = arith.constant 1.000000e+00 : f32
    %127 = vector.broadcast %cst_87 : f32 to vector<8x128xf32>
    %128 = arith.subf %127, %118 : vector<8x128xf32>
    %129 = arith.select %120, %118, %128 : vector<8x128xi1>, vector<8x128xf32>
    %cst_88 = arith.constant 9.99999997E-7 : f32
    %cst_89 = arith.constant 0.999998986 : f32
    %130 = vector.broadcast %cst_88 : f32 to vector<8x128xf32>
    %131 = arith.maximumf %130, %129 : vector<8x128xf32>
    %132 = vector.broadcast %cst_89 : f32 to vector<8x128xf32>
    %133 = arith.minimumf %132, %131 : vector<8x128xf32>
    %cst_90 = arith.constant 1.000000e+00 : f32
    %134 = vector.broadcast %cst_90 : f32 to vector<8x128xf32>
    %135 = arith.subf %134, %133 : vector<8x128xf32>
    %136 = arith.mulf %135, %135 : vector<8x128xf32>
    %137 = math.log %133 : vector<8x128xf32>
    %138 = arith.mulf %136, %137 : vector<8x128xf32>
    %139 = arith.mulf %118, %106 : vector<8x128xf32>
    %140 = arith.subf %118, %139 : vector<8x128xf32>
    %141 = arith.subf %106, %139 : vector<8x128xf32>
    %142 = arith.mulf %139, %139 : vector<8x128xf32>
    %c0_91 = arith.constant 0 : index
    %c1_92 = arith.constant 1 : index
    %c0_93 = arith.constant 0 : index
    %c0_94 = arith.constant 0 : index
    %143 = vector.load %arg4[%c0_91, %c1_92, %c0_93, %c0_94] : memref<1x28x8x128xf32, #tpu.memory_space<vmem>>, vector<1x1x8x128xf32>
    %144 = vector.shape_cast %143 : vector<1x1x8x128xf32> to vector<8x128xf32>
    %cst_95 = arith.constant dense<0.000000e+00> : vector<8x128xf32>
    %145 = tpu.matmul %9, %142, %cst_95 {dimension_numbers = #tpu.dot_dimension_numbers<[1], [0], [0], [1], [0, 0, 1, 1], [], []>} : vector<8x8xf32>, vector<8x128xf32>, vector<8x128xf32> -> vector<8x128xf32>
    %146 = arith.addf %144, %145 : vector<8x128xf32>
    %c0_96 = arith.constant 0 : index
    %c1_97 = arith.constant 1 : index
    %c0_98 = arith.constant 0 : index
    %c0_99 = arith.constant 0 : index
    %147 = vector.load %arg4[%c0_96, %c1_97, %c0_98, %c0_99] : memref<1x28x8x128xf32, #tpu.memory_space<vmem>>, vector<1x1x8x128xf32>
    %148 = vector.shape_cast %147 : vector<1x1x8x128xf32> to vector<8x128xf32>
    %149 = vector.shape_cast %146 : vector<8x128xf32> to vector<1x1x8x128xf32>
    tpu.vector_store %arg4[%c0_96, %c1_97, %c0_98, %c0_99], %149 {strides = array<i32>} : memref<1x28x8x128xf32, #tpu.memory_space<vmem>>, vector<1x1x8x128xf32>,
    %150 = arith.mulf %140, %140 : vector<8x128xf32>
    %c0_100 = arith.constant 0 : index
    %c5 = arith.constant 5 : index
    %c0_101 = arith.constant 0 : index
    %c0_102 = arith.constant 0 : index
    %151 = vector.load %arg4[%c0_100, %c5, %c0_101, %c0_102] : memref<1x28x8x128xf32, #tpu.memory_space<vmem>>, vector<1x1x8x128xf32>
    %152 = vector.shape_cast %151 : vector<1x1x8x128xf32> to vector<8x128xf32>
    %cst_103 = arith.constant dense<0.000000e+00> : vector<8x128xf32>
    %153 = tpu.matmul %9, %150, %cst_103 {dimension_numbers = #tpu.dot_dimension_numbers<[1], [0], [0], [1], [0, 0, 1, 1], [], []>} : vector<8x8xf32>, vector<8x128xf32>, vector<8x128xf32> -> vector<8x128xf32>
    %154 = arith.addf %152, %153 : vector<8x128xf32>
    %c0_104 = arith.constant 0 : index
    %c5_105 = arith.constant 5 : index
    %c0_106 = arith.constant 0 : index
    %c0_107 = arith.constant 0 : index
    %155 = vector.load %arg4[%c0_104, %c5_105, %c0_106, %c0_107] : memref<1x28x8x128xf32, #tpu.memory_space<vmem>>, vector<1x1x8x128xf32>
    %156 = vector.shape_cast %155 : vector<1x1x8x128xf32> to vector<8x128xf32>
    %157 = vector.shape_cast %154 : vector<8x128xf32> to vector<1x1x8x128xf32>
    tpu.vector_store %arg4[%c0_104, %c5_105, %c0_106, %c0_107], %157 {strides = array<i32>} : memref<1x28x8x128xf32, #tpu.memory_space<vmem>>, vector<1x1x8x128xf32>,
    %158 = arith.mulf %141, %141 : vector<8x128xf32>
    %c0_108 = arith.constant 0 : index
    %c9 = arith.constant 9 : index
    %c0_109 = arith.constant 0 : index
    %c0_110 = arith.constant 0 : index
    %159 = vector.load %arg4[%c0_108, %c9, %c0_109, %c0_110] : memref<1x28x8x128xf32, #tpu.memory_space<vmem>>, vector<1x1x8x128xf32>
    %160 = vector.shape_cast %159 : vector<1x1x8x128xf32> to vector<8x128xf32>
    %cst_111 = arith.constant dense<0.000000e+00> : vector<8x128xf32>
    %161 = tpu.matmul %9, %158, %cst_111 {dimension_numbers = #tpu.dot_dimension_numbers<[1], [0], [0], [1], [0, 0, 1, 1], [], []>} : vector<8x8xf32>, vector<8x128xf32>, vector<8x128xf32> -> vector<8x128xf32>
    %162 = arith.addf %160, %161 : vector<8x128xf32>
    %c0_112 = arith.constant 0 : index
    %c9_113 = arith.constant 9 : index
    %c0_114 = arith.constant 0 : index
    %c0_115 = arith.constant 0 : index
    %163 = vector.load %arg4[%c0_112, %c9_113, %c0_114, %c0_115] : memref<1x28x8x128xf32, #tpu.memory_space<vmem>>, vector<1x1x8x128xf32>
    %164 = vector.shape_cast %163 : vector<1x1x8x128xf32> to vector<8x128xf32>
    %165 = vector.shape_cast %162 : vector<8x128xf32> to vector<1x1x8x128xf32>
    tpu.vector_store %arg4[%c0_112, %c9_113, %c0_114, %c0_115], %165 {strides = array<i32>} : memref<1x28x8x128xf32, #tpu.memory_space<vmem>>, vector<1x1x8x128xf32>,
    %166 = arith.mulf %138, %124 : vector<8x128xf32>
    %c0_116 = arith.constant 0 : index
    %c13 = arith.constant 13 : index
    %c0_117 = arith.constant 0 : index
    %c0_118 = arith.constant 0 : index
    %167 = vector.load %arg4[%c0_116, %c13, %c0_117, %c0_118] : memref<1x28x8x128xf32, #tpu.memory_space<vmem>>, vector<1x1x8x128xf32>
    %168 = vector.shape_cast %167 : vector<1x1x8x128xf32> to vector<8x128xf32>
    %cst_119 = arith.constant dense<0.000000e+00> : vector<8x128xf32>
    %169 = tpu.matmul %9, %166, %cst_119 {dimension_numbers = #tpu.dot_dimension_numbers<[1], [0], [0], [1], [0, 0, 1, 1], [], []>} : vector<8x8xf32>, vector<8x128xf32>, vector<8x128xf32> -> vector<8x128xf32>
    %170 = arith.addf %168, %169 : vector<8x128xf32>
    %c0_120 = arith.constant 0 : index
    %c13_121 = arith.constant 13 : index
    %c0_122 = arith.constant 0 : index
    %c0_123 = arith.constant 0 : index
    %171 = vector.load %arg4[%c0_120, %c13_121, %c0_122, %c0_123] : memref<1x28x8x128xf32, #tpu.memory_space<vmem>>, vector<1x1x8x128xf32>
    %172 = vector.shape_cast %171 : vector<1x1x8x128xf32> to vector<8x128xf32>
    %173 = vector.shape_cast %170 : vector<8x128xf32> to vector<1x1x8x128xf32>
    tpu.vector_store %arg4[%c0_120, %c13_121, %c0_122, %c0_123], %173 {strides = array<i32>} : memref<1x28x8x128xf32, #tpu.memory_space<vmem>>, vector<1x1x8x128xf32>,
    %174 = arith.mulf %138, %126 : vector<8x128xf32>
    %c0_124 = arith.constant 0 : index
    %c17 = arith.constant 17 : index
    %c0_125 = arith.constant 0 : index
    %c0_126 = arith.constant 0 : index
    %175 = vector.load %arg4[%c0_124, %c17, %c0_125, %c0_126] : memref<1x28x8x128xf32, #tpu.memory_space<vmem>>, vector<1x1x8x128xf32>
    %176 = vector.shape_cast %175 : vector<1x1x8x128xf32> to vector<8x128xf32>
    %cst_127 = arith.constant dense<0.000000e+00> : vector<8x128xf32>
    %177 = tpu.matmul %9, %174, %cst_127 {dimension_numbers = #tpu.dot_dimension_numbers<[1], [0], [0], [1], [0, 0, 1, 1], [], []>} : vector<8x8xf32>, vector<8x128xf32>, vector<8x128xf32> -> vector<8x128xf32>
    %178 = arith.addf %176, %177 : vector<8x128xf32>
    %c0_128 = arith.constant 0 : index
    %c17_129 = arith.constant 17 : index
    %c0_130 = arith.constant 0 : index
    %c0_131 = arith.constant 0 : index
    %179 = vector.load %arg4[%c0_128, %c17_129, %c0_130, %c0_131] : memref<1x28x8x128xf32, #tpu.memory_space<vmem>>, vector<1x1x8x128xf32>
    %180 = vector.shape_cast %179 : vector<1x1x8x128xf32> to vector<8x128xf32>
    %181 = vector.shape_cast %178 : vector<8x128xf32> to vector<1x1x8x128xf32>
    tpu.vector_store %arg4[%c0_128, %c17_129, %c0_130, %c0_131], %181 {strides = array<i32>} : memref<1x28x8x128xf32, #tpu.memory_space<vmem>>, vector<1x1x8x128xf32>,
    %c0_132 = arith.constant 0 : index
    %c21 = arith.constant 21 : index
    %c0_133 = arith.constant 0 : index
    %c0_134 = arith.constant 0 : index
    %182 = vector.load %arg4[%c0_132, %c21, %c0_133, %c0_134] : memref<1x28x8x128xf32, #tpu.memory_space<vmem>>, vector<1x1x8x128xf32>
    %183 = vector.shape_cast %182 : vector<1x1x8x128xf32> to vector<8x128xf32>
    %cst_135 = arith.constant dense<0.000000e+00> : vector<8x128xf32>
    %184 = tpu.matmul %9, %124, %cst_135 {dimension_numbers = #tpu.dot_dimension_numbers<[1], [0], [0], [1], [0, 0, 1, 1], [], []>} : vector<8x8xf32>, vector<8x128xf32>, vector<8x128xf32> -> vector<8x128xf32>
    %185 = arith.addf %183, %184 : vector<8x128xf32>
    %c0_136 = arith.constant 0 : index
    %c21_137 = arith.constant 21 : index
    %c0_138 = arith.constant 0 : index
    %c0_139 = arith.constant 0 : index
    %186 = vector.load %arg4[%c0_136, %c21_137, %c0_138, %c0_139] : memref<1x28x8x128xf32, #tpu.memory_space<vmem>>, vector<1x1x8x128xf32>
    %187 = vector.shape_cast %186 : vector<1x1x8x128xf32> to vector<8x128xf32>
    %188 = vector.shape_cast %185 : vector<8x128xf32> to vector<1x1x8x128xf32>
    tpu.vector_store %arg4[%c0_136, %c21_137, %c0_138, %c0_139], %188 {strides = array<i32>} : memref<1x28x8x128xf32, #tpu.memory_space<vmem>>, vector<1x1x8x128xf32>,
    %c0_140 = arith.constant 0 : index
    %c25 = arith.constant 25 : index
    %c0_141 = arith.constant 0 : index
    %c0_142 = arith.constant 0 : index
    %189 = vector.load %arg4[%c0_140, %c25, %c0_141, %c0_142] : memref<1x28x8x128xf32, #tpu.memory_space<vmem>>, vector<1x1x8x128xf32>
    %190 = vector.shape_cast %189 : vector<1x1x8x128xf32> to vector<8x128xf32>
    %cst_143 = arith.constant dense<0.000000e+00> : vector<8x128xf32>
    %191 = tpu.matmul %9, %126, %cst_143 {dimension_numbers = #tpu.dot_dimension_numbers<[1], [0], [0], [1], [0, 0, 1, 1], [], []>} : vector<8x8xf32>, vector<8x128xf32>, vector<8x128xf32> -> vector<8x128xf32>
    %192 = arith.addf %190, %191 : vector<8x128xf32>
    %c0_144 = arith.constant 0 : index
    %c25_145 = arith.constant 25 : index
    %c0_146 = arith.constant 0 : index
    %c0_147 = arith.constant 0 : index
    %193 = vector.load %arg4[%c0_144, %c25_145, %c0_146, %c0_147] : memref<1x28x8x128xf32, #tpu.memory_space<vmem>>, vector<1x1x8x128xf32>
    %194 = vector.shape_cast %193 : vector<1x1x8x128xf32> to vector<8x128xf32>
    %195 = vector.shape_cast %192 : vector<8x128xf32> to vector<1x1x8x128xf32>
    tpu.vector_store %arg4[%c0_144, %c25_145, %c0_146, %c0_147], %195 {strides = array<i32>} : memref<1x28x8x128xf32, #tpu.memory_space<vmem>>, vector<1x1x8x128xf32>,
    %c0_148 = arith.constant 0 : index
    %c2 = arith.constant 2 : index
    %c0_149 = arith.constant 0 : index
    %c0_150 = arith.constant 0 : index
    %196 = vector.load %arg2[%c0_148, %c2, %c0_149, %c0_150] : memref<1x4x8x128xf32, #tpu.memory_space<vmem>>, vector<1x1x8x128xf32>
    %197 = vector.shape_cast %196 : vector<1x1x8x128xf32> to vector<8x128xf32>
    %c0_151 = arith.constant 0 : index
    %c2_152 = arith.constant 2 : index
    %c0_153 = arith.constant 0 : index
    %c0_154 = arith.constant 0 : index
    %198 = vector.load %arg3[%c0_151, %c2_152, %c0_153, %c0_154] : memref<1x4x8x128xf32, #tpu.memory_space<vmem>>, vector<1x1x8x128xf32>
    %199 = vector.shape_cast %198 : vector<1x1x8x128xf32> to vector<8x128xf32>
    %cst_155 = arith.constant 0.000000e+00 : f32
    %200 = vector.broadcast %cst_155 : f32 to vector<8x128xf32>
    %201 = arith.subf %200, %197 : vector<8x128xf32>
    %cst_156 = arith.constant 8.000000e+01 : f32
    %202 = vector.broadcast %cst_156 : f32 to vector<8x128xf32>
    %203 = arith.minimumf %201, %202 : vector<8x128xf32>
    %204 = math.exp %203 : vector<8x128xf32>
    %cst_157 = arith.constant 1.000000e+00 : f32
    %205 = vector.broadcast %cst_157 : f32 to vector<8x128xf32>
    %206 = arith.addf %205, %204 : vector<8x128xf32>
    %207 = tpu.reciprocal %206 {approx = true} : vector<8x128xf32> -> vector<8x128xf32>
    %208 = arith.mulf %206, %207 : vector<8x128xf32>
    %cst_158 = arith.constant 2.000000e+00 : f32
    %209 = vector.broadcast %cst_158 : f32 to vector<8x128xf32>
    %210 = arith.subf %209, %208 : vector<8x128xf32>
    %211 = arith.mulf %207, %210 : vector<8x128xf32>
    %cst_159 = arith.constant 1.000000e+00 : f32
    %212 = vector.broadcast %cst_159 : f32 to vector<8x128xf32>
    %213 = arith.cmpf oeq, %199, %212 : vector<8x128xf32>
    %cst_160 = arith.constant 0.000000e+00 : f32
    %214 = vector.broadcast %cst_160 : f32 to vector<8x128xf32>
    %215 = arith.cmpf oeq, %199, %214 : vector<8x128xf32>
    %216 = arith.extui %213 : vector<8x128xi1> to vector<8x128xi32>
    %217 = arith.sitofp %216 : vector<8x128xi32> to vector<8x128xf32>
    %218 = arith.extui %215 : vector<8x128xi1> to vector<8x128xi32>
    %219 = arith.sitofp %218 : vector<8x128xi32> to vector<8x128xf32>
    %cst_161 = arith.constant 1.000000e+00 : f32
    %220 = vector.broadcast %cst_161 : f32 to vector<8x128xf32>
    %221 = arith.subf %220, %211 : vector<8x128xf32>
    %222 = arith.select %213, %211, %221 : vector<8x128xi1>, vector<8x128xf32>
    %cst_162 = arith.constant 9.99999997E-7 : f32
    %cst_163 = arith.constant 0.999998986 : f32
    %223 = vector.broadcast %cst_162 : f32 to vector<8x128xf32>
    %224 = arith.maximumf %223, %222 : vector<8x128xf32>
    %225 = vector.broadcast %cst_163 : f32 to vector<8x128xf32>
    %226 = arith.minimumf %225, %224 : vector<8x128xf32>
    %cst_164 = arith.constant 1.000000e+00 : f32
    %227 = vector.broadcast %cst_164 : f32 to vector<8x128xf32>
    %228 = arith.subf %227, %226 : vector<8x128xf32>
    %229 = arith.mulf %228, %228 : vector<8x128xf32>
    %230 = math.log %226 : vector<8x128xf32>
    %231 = arith.mulf %229, %230 : vector<8x128xf32>
    %232 = arith.mulf %211, %199 : vector<8x128xf32>
    %233 = arith.subf %211, %232 : vector<8x128xf32>
    %234 = arith.subf %199, %232 : vector<8x128xf32>
    %235 = arith.mulf %232, %232 : vector<8x128xf32>
    %c0_165 = arith.constant 0 : index
    %c2_166 = arith.constant 2 : index
    %c0_167 = arith.constant 0 : index
    %c0_168 = arith.constant 0 : index
    %236 = vector.load %arg4[%c0_165, %c2_166, %c0_167, %c0_168] : memref<1x28x8x128xf32, #tpu.memory_space<vmem>>, vector<1x1x8x128xf32>
    %237 = vector.shape_cast %236 : vector<1x1x8x128xf32> to vector<8x128xf32>
    %cst_169 = arith.constant dense<0.000000e+00> : vector<8x128xf32>
    %238 = tpu.matmul %9, %235, %cst_169 {dimension_numbers = #tpu.dot_dimension_numbers<[1], [0], [0], [1], [0, 0, 1, 1], [], []>} : vector<8x8xf32>, vector<8x128xf32>, vector<8x128xf32> -> vector<8x128xf32>
    %239 = arith.addf %237, %238 : vector<8x128xf32>
    %c0_170 = arith.constant 0 : index
    %c2_171 = arith.constant 2 : index
    %c0_172 = arith.constant 0 : index
    %c0_173 = arith.constant 0 : index
    %240 = vector.load %arg4[%c0_170, %c2_171, %c0_172, %c0_173] : memref<1x28x8x128xf32, #tpu.memory_space<vmem>>, vector<1x1x8x128xf32>
    %241 = vector.shape_cast %240 : vector<1x1x8x128xf32> to vector<8x128xf32>
    %242 = vector.shape_cast %239 : vector<8x128xf32> to vector<1x1x8x128xf32>
    tpu.vector_store %arg4[%c0_170, %c2_171, %c0_172, %c0_173], %242 {strides = array<i32>} : memref<1x28x8x128xf32, #tpu.memory_space<vmem>>, vector<1x1x8x128xf32>,
    %243 = arith.mulf %233, %233 : vector<8x128xf32>
    %c0_174 = arith.constant 0 : index
    %c6 = arith.constant 6 : index
    %c0_175 = arith.constant 0 : index
    %c0_176 = arith.constant 0 : index
    %244 = vector.load %arg4[%c0_174, %c6, %c0_175, %c0_176] : memref<1x28x8x128xf32, #tpu.memory_space<vmem>>, vector<1x1x8x128xf32>
    %245 = vector.shape_cast %244 : vector<1x1x8x128xf32> to vector<8x128xf32>
    %cst_177 = arith.constant dense<0.000000e+00> : vector<8x128xf32>
    %246 = tpu.matmul %9, %243, %cst_177 {dimension_numbers = #tpu.dot_dimension_numbers<[1], [0], [0], [1], [0, 0, 1, 1], [], []>} : vector<8x8xf32>, vector<8x128xf32>, vector<8x128xf32> -> vector<8x128xf32>
    %247 = arith.addf %245, %246 : vector<8x128xf32>
    %c0_178 = arith.constant 0 : index
    %c6_179 = arith.constant 6 : index
    %c0_180 = arith.constant 0 : index
    %c0_181 = arith.constant 0 : index
    %248 = vector.load %arg4[%c0_178, %c6_179, %c0_180, %c0_181] : memref<1x28x8x128xf32, #tpu.memory_space<vmem>>, vector<1x1x8x128xf32>
    %249 = vector.shape_cast %248 : vector<1x1x8x128xf32> to vector<8x128xf32>
    %250 = vector.shape_cast %247 : vector<8x128xf32> to vector<1x1x8x128xf32>
    tpu.vector_store %arg4[%c0_178, %c6_179, %c0_180, %c0_181], %250 {strides = array<i32>} : memref<1x28x8x128xf32, #tpu.memory_space<vmem>>, vector<1x1x8x128xf32>,
    %251 = arith.mulf %234, %234 : vector<8x128xf32>
    %c0_182 = arith.constant 0 : index
    %c10 = arith.constant 10 : index
    %c0_183 = arith.constant 0 : index
    %c0_184 = arith.constant 0 : index
    %252 = vector.load %arg4[%c0_182, %c10, %c0_183, %c0_184] : memref<1x28x8x128xf32, #tpu.memory_space<vmem>>, vector<1x1x8x128xf32>
    %253 = vector.shape_cast %252 : vector<1x1x8x128xf32> to vector<8x128xf32>
    %cst_185 = arith.constant dense<0.000000e+00> : vector<8x128xf32>
    %254 = tpu.matmul %9, %251, %cst_185 {dimension_numbers = #tpu.dot_dimension_numbers<[1], [0], [0], [1], [0, 0, 1, 1], [], []>} : vector<8x8xf32>, vector<8x128xf32>, vector<8x128xf32> -> vector<8x128xf32>
    %255 = arith.addf %253, %254 : vector<8x128xf32>
    %c0_186 = arith.constant 0 : index
    %c10_187 = arith.constant 10 : index
    %c0_188 = arith.constant 0 : index
    %c0_189 = arith.constant 0 : index
    %256 = vector.load %arg4[%c0_186, %c10_187, %c0_188, %c0_189] : memref<1x28x8x128xf32, #tpu.memory_space<vmem>>, vector<1x1x8x128xf32>
    %257 = vector.shape_cast %256 : vector<1x1x8x128xf32> to vector<8x128xf32>
    %258 = vector.shape_cast %255 : vector<8x128xf32> to vector<1x1x8x128xf32>
    tpu.vector_store %arg4[%c0_186, %c10_187, %c0_188, %c0_189], %258 {strides = array<i32>} : memref<1x28x8x128xf32, #tpu.memory_space<vmem>>, vector<1x1x8x128xf32>,
    %259 = arith.mulf %231, %217 : vector<8x128xf32>
    %c0_190 = arith.constant 0 : index
    %c14 = arith.constant 14 : index
    %c0_191 = arith.constant 0 : index
    %c0_192 = arith.constant 0 : index
    %260 = vector.load %arg4[%c0_190, %c14, %c0_191, %c0_192] : memref<1x28x8x128xf32, #tpu.memory_space<vmem>>, vector<1x1x8x128xf32>
    %261 = vector.shape_cast %260 : vector<1x1x8x128xf32> to vector<8x128xf32>
    %cst_193 = arith.constant dense<0.000000e+00> : vector<8x128xf32>
    %262 = tpu.matmul %9, %259, %cst_193 {dimension_numbers = #tpu.dot_dimension_numbers<[1], [0], [0], [1], [0, 0, 1, 1], [], []>} : vector<8x8xf32>, vector<8x128xf32>, vector<8x128xf32> -> vector<8x128xf32>
    %263 = arith.addf %261, %262 : vector<8x128xf32>
    %c0_194 = arith.constant 0 : index
    %c14_195 = arith.constant 14 : index
    %c0_196 = arith.constant 0 : index
    %c0_197 = arith.constant 0 : index
    %264 = vector.load %arg4[%c0_194, %c14_195, %c0_196, %c0_197] : memref<1x28x8x128xf32, #tpu.memory_space<vmem>>, vector<1x1x8x128xf32>
    %265 = vector.shape_cast %264 : vector<1x1x8x128xf32> to vector<8x128xf32>
    %266 = vector.shape_cast %263 : vector<8x128xf32> to vector<1x1x8x128xf32>
    tpu.vector_store %arg4[%c0_194, %c14_195, %c0_196, %c0_197], %266 {strides = array<i32>} : memref<1x28x8x128xf32, #tpu.memory_space<vmem>>, vector<1x1x8x128xf32>,
    %267 = arith.mulf %231, %219 : vector<8x128xf32>
    %c0_198 = arith.constant 0 : index
    %c18 = arith.constant 18 : index
    %c0_199 = arith.constant 0 : index
    %c0_200 = arith.constant 0 : index
    %268 = vector.load %arg4[%c0_198, %c18, %c0_199, %c0_200] : memref<1x28x8x128xf32, #tpu.memory_space<vmem>>, vector<1x1x8x128xf32>
    %269 = vector.shape_cast %268 : vector<1x1x8x128xf32> to vector<8x128xf32>
    %cst_201 = arith.constant dense<0.000000e+00> : vector<8x128xf32>
    %270 = tpu.matmul %9, %267, %cst_201 {dimension_numbers = #tpu.dot_dimension_numbers<[1], [0], [0], [1], [0, 0, 1, 1], [], []>} : vector<8x8xf32>, vector<8x128xf32>, vector<8x128xf32> -> vector<8x128xf32>
    %271 = arith.addf %269, %270 : vector<8x128xf32>
    %c0_202 = arith.constant 0 : index
    %c18_203 = arith.constant 18 : index
    %c0_204 = arith.constant 0 : index
    %c0_205 = arith.constant 0 : index
    %272 = vector.load %arg4[%c0_202, %c18_203, %c0_204, %c0_205] : memref<1x28x8x128xf32, #tpu.memory_space<vmem>>, vector<1x1x8x128xf32>
    %273 = vector.shape_cast %272 : vector<1x1x8x128xf32> to vector<8x128xf32>
    %274 = vector.shape_cast %271 : vector<8x128xf32> to vector<1x1x8x128xf32>
    tpu.vector_store %arg4[%c0_202, %c18_203, %c0_204, %c0_205], %274 {strides = array<i32>} : memref<1x28x8x128xf32, #tpu.memory_space<vmem>>, vector<1x1x8x128xf32>,
    %c0_206 = arith.constant 0 : index
    %c22 = arith.constant 22 : index
    %c0_207 = arith.constant 0 : index
    %c0_208 = arith.constant 0 : index
    %275 = vector.load %arg4[%c0_206, %c22, %c0_207, %c0_208] : memref<1x28x8x128xf32, #tpu.memory_space<vmem>>, vector<1x1x8x128xf32>
    %276 = vector.shape_cast %275 : vector<1x1x8x128xf32> to vector<8x128xf32>
    %cst_209 = arith.constant dense<0.000000e+00> : vector<8x128xf32>
    %277 = tpu.matmul %9, %217, %cst_209 {dimension_numbers = #tpu.dot_dimension_numbers<[1], [0], [0], [1], [0, 0, 1, 1], [], []>} : vector<8x8xf32>, vector<8x128xf32>, vector<8x128xf32> -> vector<8x128xf32>
    %278 = arith.addf %276, %277 : vector<8x128xf32>
    %c0_210 = arith.constant 0 : index
    %c22_211 = arith.constant 22 : index
    %c0_212 = arith.constant 0 : index
    %c0_213 = arith.constant 0 : index
    %279 = vector.load %arg4[%c0_210, %c22_211, %c0_212, %c0_213] : memref<1x28x8x128xf32, #tpu.memory_space<vmem>>, vector<1x1x8x128xf32>
    %280 = vector.shape_cast %279 : vector<1x1x8x128xf32> to vector<8x128xf32>
    %281 = vector.shape_cast %278 : vector<8x128xf32> to vector<1x1x8x128xf32>
    tpu.vector_store %arg4[%c0_210, %c22_211, %c0_212, %c0_213], %281 {strides = array<i32>} : memref<1x28x8x128xf32, #tpu.memory_space<vmem>>, vector<1x1x8x128xf32>,
    %c0_214 = arith.constant 0 : index
    %c26 = arith.constant 26 : index
    %c0_215 = arith.constant 0 : index
    %c0_216 = arith.constant 0 : index
    %282 = vector.load %arg4[%c0_214, %c26, %c0_215, %c0_216] : memref<1x28x8x128xf32, #tpu.memory_space<vmem>>, vector<1x1x8x128xf32>
    %283 = vector.shape_cast %282 : vector<1x1x8x128xf32> to vector<8x128xf32>
    %cst_217 = arith.constant dense<0.000000e+00> : vector<8x128xf32>
    %284 = tpu.matmul %9, %219, %cst_217 {dimension_numbers = #tpu.dot_dimension_numbers<[1], [0], [0], [1], [0, 0, 1, 1], [], []>} : vector<8x8xf32>, vector<8x128xf32>, vector<8x128xf32> -> vector<8x128xf32>
    %285 = arith.addf %283, %284 : vector<8x128xf32>
    %c0_218 = arith.constant 0 : index
    %c26_219 = arith.constant 26 : index
    %c0_220 = arith.constant 0 : index
    %c0_221 = arith.constant 0 : index
    %286 = vector.load %arg4[%c0_218, %c26_219, %c0_220, %c0_221] : memref<1x28x8x128xf32, #tpu.memory_space<vmem>>, vector<1x1x8x128xf32>
    %287 = vector.shape_cast %286 : vector<1x1x8x128xf32> to vector<8x128xf32>
    %288 = vector.shape_cast %285 : vector<8x128xf32> to vector<1x1x8x128xf32>
    tpu.vector_store %arg4[%c0_218, %c26_219, %c0_220, %c0_221], %288 {strides = array<i32>} : memref<1x28x8x128xf32, #tpu.memory_space<vmem>>, vector<1x1x8x128xf32>,
    %c0_222 = arith.constant 0 : index
    %c3 = arith.constant 3 : index
    %c0_223 = arith.constant 0 : index
    %c0_224 = arith.constant 0 : index
    %289 = vector.load %arg2[%c0_222, %c3, %c0_223, %c0_224] : memref<1x4x8x128xf32, #tpu.memory_space<vmem>>, vector<1x1x8x128xf32>
    %290 = vector.shape_cast %289 : vector<1x1x8x128xf32> to vector<8x128xf32>
    %c0_225 = arith.constant 0 : index
    %c3_226 = arith.constant 3 : index
    %c0_227 = arith.constant 0 : index
    %c0_228 = arith.constant 0 : index
    %291 = vector.load %arg3[%c0_225, %c3_226, %c0_227, %c0_228] : memref<1x4x8x128xf32, #tpu.memory_space<vmem>>, vector<1x1x8x128xf32>
    %292 = vector.shape_cast %291 : vector<1x1x8x128xf32> to vector<8x128xf32>
    %cst_229 = arith.constant 0.000000e+00 : f32
    %293 = vector.broadcast %cst_229 : f32 to vector<8x128xf32>
    %294 = arith.subf %293, %290 : vector<8x128xf32>
    %cst_230 = arith.constant 8.000000e+01 : f32
    %295 = vector.broadcast %cst_230 : f32 to vector<8x128xf32>
    %296 = arith.minimumf %294, %295 : vector<8x128xf32>
    %297 = math.exp %296 : vector<8x128xf32>
    %cst_231 = arith.constant 1.000000e+00 : f32
    %298 = vector.broadcast %cst_231 : f32 to vector<8x128xf32>
    %299 = arith.addf %298, %297 : vector<8x128xf32>
    %300 = tpu.reciprocal %299 {approx = true} : vector<8x128xf32> -> vector<8x128xf32>
    %301 = arith.mulf %299, %300 : vector<8x128xf32>
    %cst_232 = arith.constant 2.000000e+00 : f32
    %302 = vector.broadcast %cst_232 : f32 to vector<8x128xf32>
    %303 = arith.subf %302, %301 : vector<8x128xf32>
    %304 = arith.mulf %300, %303 : vector<8x128xf32>
    %cst_233 = arith.constant 1.000000e+00 : f32
    %305 = vector.broadcast %cst_233 : f32 to vector<8x128xf32>
    %306 = arith.cmpf oeq, %292, %305 : vector<8x128xf32>
    %cst_234 = arith.constant 0.000000e+00 : f32
    %307 = vector.broadcast %cst_234 : f32 to vector<8x128xf32>
    %308 = arith.cmpf oeq, %292, %307 : vector<8x128xf32>
    %309 = arith.extui %306 : vector<8x128xi1> to vector<8x128xi32>
    %310 = arith.sitofp %309 : vector<8x128xi32> to vector<8x128xf32>
    %311 = arith.extui %308 : vector<8x128xi1> to vector<8x128xi32>
    %312 = arith.sitofp %311 : vector<8x128xi32> to vector<8x128xf32>
    %cst_235 = arith.constant 1.000000e+00 : f32
    %313 = vector.broadcast %cst_235 : f32 to vector<8x128xf32>
    %314 = arith.subf %313, %304 : vector<8x128xf32>
    %315 = arith.select %306, %304, %314 : vector<8x128xi1>, vector<8x128xf32>
    %cst_236 = arith.constant 9.99999997E-7 : f32
    %cst_237 = arith.constant 0.999998986 : f32
    %316 = vector.broadcast %cst_236 : f32 to vector<8x128xf32>
    %317 = arith.maximumf %316, %315 : vector<8x128xf32>
    %318 = vector.broadcast %cst_237 : f32 to vector<8x128xf32>
    %319 = arith.minimumf %318, %317 : vector<8x128xf32>
    %cst_238 = arith.constant 1.000000e+00 : f32
    %320 = vector.broadcast %cst_238 : f32 to vector<8x128xf32>
    %321 = arith.subf %320, %319 : vector<8x128xf32>
    %322 = arith.mulf %321, %321 : vector<8x128xf32>
    %323 = math.log %319 : vector<8x128xf32>
    %324 = arith.mulf %322, %323 : vector<8x128xf32>
    %325 = arith.mulf %304, %292 : vector<8x128xf32>
    %326 = arith.subf %304, %325 : vector<8x128xf32>
    %327 = arith.subf %292, %325 : vector<8x128xf32>
    %328 = arith.mulf %325, %325 : vector<8x128xf32>
    %c0_239 = arith.constant 0 : index
    %c3_240 = arith.constant 3 : index
    %c0_241 = arith.constant 0 : index
    %c0_242 = arith.constant 0 : index
    %329 = vector.load %arg4[%c0_239, %c3_240, %c0_241, %c0_242] : memref<1x28x8x128xf32, #tpu.memory_space<vmem>>, vector<1x1x8x128xf32>
    %330 = vector.shape_cast %329 : vector<1x1x8x128xf32> to vector<8x128xf32>
    %cst_243 = arith.constant dense<0.000000e+00> : vector<8x128xf32>
    %331 = tpu.matmul %9, %328, %cst_243 {dimension_numbers = #tpu.dot_dimension_numbers<[1], [0], [0], [1], [0, 0, 1, 1], [], []>} : vector<8x8xf32>, vector<8x128xf32>, vector<8x128xf32> -> vector<8x128xf32>
    %332 = arith.addf %330, %331 : vector<8x128xf32>
    %c0_244 = arith.constant 0 : index
    %c3_245 = arith.constant 3 : index
    %c0_246 = arith.constant 0 : index
    %c0_247 = arith.constant 0 : index
    %333 = vector.load %arg4[%c0_244, %c3_245, %c0_246, %c0_247] : memref<1x28x8x128xf32, #tpu.memory_space<vmem>>, vector<1x1x8x128xf32>
    %334 = vector.shape_cast %333 : vector<1x1x8x128xf32> to vector<8x128xf32>
    %335 = vector.shape_cast %332 : vector<8x128xf32> to vector<1x1x8x128xf32>
    tpu.vector_store %arg4[%c0_244, %c3_245, %c0_246, %c0_247], %335 {strides = array<i32>} : memref<1x28x8x128xf32, #tpu.memory_space<vmem>>, vector<1x1x8x128xf32>,
    %336 = arith.mulf %326, %326 : vector<8x128xf32>
    %c0_248 = arith.constant 0 : index
    %c7 = arith.constant 7 : index
    %c0_249 = arith.constant 0 : index
    %c0_250 = arith.constant 0 : index
    %337 = vector.load %arg4[%c0_248, %c7, %c0_249, %c0_250] : memref<1x28x8x128xf32, #tpu.memory_space<vmem>>, vector<1x1x8x128xf32>
    %338 = vector.shape_cast %337 : vector<1x1x8x128xf32> to vector<8x128xf32>
    %cst_251 = arith.constant dense<0.000000e+00> : vector<8x128xf32>
    %339 = tpu.matmul %9, %336, %cst_251 {dimension_numbers = #tpu.dot_dimension_numbers<[1], [0], [0], [1], [0, 0, 1, 1], [], []>} : vector<8x8xf32>, vector<8x128xf32>, vector<8x128xf32> -> vector<8x128xf32>
    %340 = arith.addf %338, %339 : vector<8x128xf32>
    %c0_252 = arith.constant 0 : index
    %c7_253 = arith.constant 7 : index
    %c0_254 = arith.constant 0 : index
    %c0_255 = arith.constant 0 : index
    %341 = vector.load %arg4[%c0_252, %c7_253, %c0_254, %c0_255] : memref<1x28x8x128xf32, #tpu.memory_space<vmem>>, vector<1x1x8x128xf32>
    %342 = vector.shape_cast %341 : vector<1x1x8x128xf32> to vector<8x128xf32>
    %343 = vector.shape_cast %340 : vector<8x128xf32> to vector<1x1x8x128xf32>
    tpu.vector_store %arg4[%c0_252, %c7_253, %c0_254, %c0_255], %343 {strides = array<i32>} : memref<1x28x8x128xf32, #tpu.memory_space<vmem>>, vector<1x1x8x128xf32>,
    %344 = arith.mulf %327, %327 : vector<8x128xf32>
    %c0_256 = arith.constant 0 : index
    %c11 = arith.constant 11 : index
    %c0_257 = arith.constant 0 : index
    %c0_258 = arith.constant 0 : index
    %345 = vector.load %arg4[%c0_256, %c11, %c0_257, %c0_258] : memref<1x28x8x128xf32, #tpu.memory_space<vmem>>, vector<1x1x8x128xf32>
    %346 = vector.shape_cast %345 : vector<1x1x8x128xf32> to vector<8x128xf32>
    %cst_259 = arith.constant dense<0.000000e+00> : vector<8x128xf32>
    %347 = tpu.matmul %9, %344, %cst_259 {dimension_numbers = #tpu.dot_dimension_numbers<[1], [0], [0], [1], [0, 0, 1, 1], [], []>} : vector<8x8xf32>, vector<8x128xf32>, vector<8x128xf32> -> vector<8x128xf32>
    %348 = arith.addf %346, %347 : vector<8x128xf32>
    %c0_260 = arith.constant 0 : index
    %c11_261 = arith.constant 11 : index
    %c0_262 = arith.constant 0 : index
    %c0_263 = arith.constant 0 : index
    %349 = vector.load %arg4[%c0_260, %c11_261, %c0_262, %c0_263] : memref<1x28x8x128xf32, #tpu.memory_space<vmem>>, vector<1x1x8x128xf32>
    %350 = vector.shape_cast %349 : vector<1x1x8x128xf32> to vector<8x128xf32>
    %351 = vector.shape_cast %348 : vector<8x128xf32> to vector<1x1x8x128xf32>
    tpu.vector_store %arg4[%c0_260, %c11_261, %c0_262, %c0_263], %351 {strides = array<i32>} : memref<1x28x8x128xf32, #tpu.memory_space<vmem>>, vector<1x1x8x128xf32>,
    %352 = arith.mulf %324, %310 : vector<8x128xf32>
    %c0_264 = arith.constant 0 : index
    %c15 = arith.constant 15 : index
    %c0_265 = arith.constant 0 : index
    %c0_266 = arith.constant 0 : index
    %353 = vector.load %arg4[%c0_264, %c15, %c0_265, %c0_266] : memref<1x28x8x128xf32, #tpu.memory_space<vmem>>, vector<1x1x8x128xf32>
    %354 = vector.shape_cast %353 : vector<1x1x8x128xf32> to vector<8x128xf32>
    %cst_267 = arith.constant dense<0.000000e+00> : vector<8x128xf32>
    %355 = tpu.matmul %9, %352, %cst_267 {dimension_numbers = #tpu.dot_dimension_numbers<[1], [0], [0], [1], [0, 0, 1, 1], [], []>} : vector<8x8xf32>, vector<8x128xf32>, vector<8x128xf32> -> vector<8x128xf32>
    %356 = arith.addf %354, %355 : vector<8x128xf32>
    %c0_268 = arith.constant 0 : index
    %c15_269 = arith.constant 15 : index
    %c0_270 = arith.constant 0 : index
    %c0_271 = arith.constant 0 : index
    %357 = vector.load %arg4[%c0_268, %c15_269, %c0_270, %c0_271] : memref<1x28x8x128xf32, #tpu.memory_space<vmem>>, vector<1x1x8x128xf32>
    %358 = vector.shape_cast %357 : vector<1x1x8x128xf32> to vector<8x128xf32>
    %359 = vector.shape_cast %356 : vector<8x128xf32> to vector<1x1x8x128xf32>
    tpu.vector_store %arg4[%c0_268, %c15_269, %c0_270, %c0_271], %359 {strides = array<i32>} : memref<1x28x8x128xf32, #tpu.memory_space<vmem>>, vector<1x1x8x128xf32>,
    %360 = arith.mulf %324, %312 : vector<8x128xf32>
    %c0_272 = arith.constant 0 : index
    %c19 = arith.constant 19 : index
    %c0_273 = arith.constant 0 : index
    %c0_274 = arith.constant 0 : index
    %361 = vector.load %arg4[%c0_272, %c19, %c0_273, %c0_274] : memref<1x28x8x128xf32, #tpu.memory_space<vmem>>, vector<1x1x8x128xf32>
    %362 = vector.shape_cast %361 : vector<1x1x8x128xf32> to vector<8x128xf32>
    %cst_275 = arith.constant dense<0.000000e+00> : vector<8x128xf32>
    %363 = tpu.matmul %9, %360, %cst_275 {dimension_numbers = #tpu.dot_dimension_numbers<[1], [0], [0], [1], [0, 0, 1, 1], [], []>} : vector<8x8xf32>, vector<8x128xf32>, vector<8x128xf32> -> vector<8x128xf32>
    %364 = arith.addf %362, %363 : vector<8x128xf32>
    %c0_276 = arith.constant 0 : index
    %c19_277 = arith.constant 19 : index
    %c0_278 = arith.constant 0 : index
    %c0_279 = arith.constant 0 : index
    %365 = vector.load %arg4[%c0_276, %c19_277, %c0_278, %c0_279] : memref<1x28x8x128xf32, #tpu.memory_space<vmem>>, vector<1x1x8x128xf32>
    %366 = vector.shape_cast %365 : vector<1x1x8x128xf32> to vector<8x128xf32>
    %367 = vector.shape_cast %364 : vector<8x128xf32> to vector<1x1x8x128xf32>
    tpu.vector_store %arg4[%c0_276, %c19_277, %c0_278, %c0_279], %367 {strides = array<i32>} : memref<1x28x8x128xf32, #tpu.memory_space<vmem>>, vector<1x1x8x128xf32>,
    %c0_280 = arith.constant 0 : index
    %c23 = arith.constant 23 : index
    %c0_281 = arith.constant 0 : index
    %c0_282 = arith.constant 0 : index
    %368 = vector.load %arg4[%c0_280, %c23, %c0_281, %c0_282] : memref<1x28x8x128xf32, #tpu.memory_space<vmem>>, vector<1x1x8x128xf32>
    %369 = vector.shape_cast %368 : vector<1x1x8x128xf32> to vector<8x128xf32>
    %cst_283 = arith.constant dense<0.000000e+00> : vector<8x128xf32>
    %370 = tpu.matmul %9, %310, %cst_283 {dimension_numbers = #tpu.dot_dimension_numbers<[1], [0], [0], [1], [0, 0, 1, 1], [], []>} : vector<8x8xf32>, vector<8x128xf32>, vector<8x128xf32> -> vector<8x128xf32>
    %371 = arith.addf %369, %370 : vector<8x128xf32>
    %c0_284 = arith.constant 0 : index
    %c23_285 = arith.constant 23 : index
    %c0_286 = arith.constant 0 : index
    %c0_287 = arith.constant 0 : index
    %372 = vector.load %arg4[%c0_284, %c23_285, %c0_286, %c0_287] : memref<1x28x8x128xf32, #tpu.memory_space<vmem>>, vector<1x1x8x128xf32>
    %373 = vector.shape_cast %372 : vector<1x1x8x128xf32> to vector<8x128xf32>
    %374 = vector.shape_cast %371 : vector<8x128xf32> to vector<1x1x8x128xf32>
    tpu.vector_store %arg4[%c0_284, %c23_285, %c0_286, %c0_287], %374 {strides = array<i32>} : memref<1x28x8x128xf32, #tpu.memory_space<vmem>>, vector<1x1x8x128xf32>,
    %c0_288 = arith.constant 0 : index
    %c27 = arith.constant 27 : index
    %c0_289 = arith.constant 0 : index
    %c0_290 = arith.constant 0 : index
    %375 = vector.load %arg4[%c0_288, %c27, %c0_289, %c0_290] : memref<1x28x8x128xf32, #tpu.memory_space<vmem>>, vector<1x1x8x128xf32>
    %376 = vector.shape_cast %375 : vector<1x1x8x128xf32> to vector<8x128xf32>
    %cst_291 = arith.constant dense<0.000000e+00> : vector<8x128xf32>
    %377 = tpu.matmul %9, %312, %cst_291 {dimension_numbers = #tpu.dot_dimension_numbers<[1], [0], [0], [1], [0, 0, 1, 1], [], []>} : vector<8x8xf32>, vector<8x128xf32>, vector<8x128xf32> -> vector<8x128xf32>
    %378 = arith.addf %376, %377 : vector<8x128xf32>
    %c0_292 = arith.constant 0 : index
    %c27_293 = arith.constant 27 : index
    %c0_294 = arith.constant 0 : index
    %c0_295 = arith.constant 0 : index
    %379 = vector.load %arg4[%c0_292, %c27_293, %c0_294, %c0_295] : memref<1x28x8x128xf32, #tpu.memory_space<vmem>>, vector<1x1x8x128xf32>
    %380 = vector.shape_cast %379 : vector<1x1x8x128xf32> to vector<8x128xf32>
    %381 = vector.shape_cast %378 : vector<8x128xf32> to vector<1x1x8x128xf32>
    tpu.vector_store %arg4[%c0_292, %c27_293, %c0_294, %c0_295], %381 {strides = array<i32>} : memref<1x28x8x128xf32, #tpu.memory_space<vmem>>, vector<1x1x8x128xf32>,
    return
  }
  func.func @transform_0(%arg0: i32, %arg1: i32) -> (i32, i32, i32, i32) {
    %c0_i32 = arith.constant 0 : i32
    %c0_i32_0 = arith.constant 0 : i32
    %c0_i32_1 = arith.constant 0 : i32
    return %arg1, %c0_i32, %arg0, %c0_i32_0 : i32, i32, i32, i32
  }
  func.func @transform_1(%arg0: i32, %arg1: i32) -> (i32, i32, i32, i32) {
    %c0_i32 = arith.constant 0 : i32
    %c0_i32_0 = arith.constant 0 : i32
    %c0_i32_1 = arith.constant 0 : i32
    return %arg1, %c0_i32, %arg0, %c0_i32_0 : i32, i32, i32, i32
  }
  func.func @transform_2(%arg0: i32, %arg1: i32) -> (i32, i32, i32, i32) {
    %c0_i32 = arith.constant 0 : i32
    %c0_i32_0 = arith.constant 0 : i32
    %c0_i32_1 = arith.constant 0 : i32
    %c0_i32_2 = arith.constant 0 : i32
    return %arg0, %c0_i32, %c0_i32_0, %c0_i32_1 : i32, i32, i32, i32
  }
}

</mosaic_0001>

<bundles_post_ra>
// kernel: tpu_custom_call.1
= control target key start
LH: loop header
LB: loop body
LE: loop exit
PB: predicated region body
PF: predicated region fallthrough
CT: control target
= control target key end

     0   :  { %7 = vsyncpa [#allocation3], 0  ;;  %s3564_s0 = inlined_call_operand.hbm [shape: f32[2,4,8,128], index: 0, kind: input, shape index: {}]   ;;  %s3565_s1 = inlined_call_operand.hbm [shape: f32[2,4,8,128], index: 1, kind: input, shape index: {}]   ;;  %s3566_s2 = inlined_call_operand.hbm [shape: f32[1,28,8,128], index: 2, kind: output, shape index: {}]  }
   0x1   :  { %9 = vsyncpa [#allocation3 + $0x1], 0 }
   0x2   :  { %10 = vsyncpa [#allocation6], 0 }
   0x3   :  { %12 = vsyncpa [#allocation6 + $0x1], 0 }
   0x4   :  { %13 = vsyncpa [#allocation4], 0  ;;  %s3107_s9 = smov 0   ;;  %s3109_s10 = smov 0  }
   0x5   :  { %s3111_s11 = smov 0   ;;  %s3113_s12 = smov 0  }
   0x6   :  { %s3115_s13 = smov 0   ;;  %s3117_s14 = smov 0  }
   0x7 LB: > { %s2570_s15 = sadd.s32 4294967295, %s3079_s14   ;;  %s28_s16 = sadd.s32 1, %s3075_s13  ;;  %s3079_s14 = sphi %s3117_s14, %s19_s14   ;;  %s3075_s13 = sphi %s3115_s13, %s3578_s13   ;;  %s3071_s12 = sphi %s3113_s12, %s3577_s12   ;;  %s3067_s11 = sphi %s3111_s11, %s3576_s11   ;;  %s3063_s10 = sphi %s3109_s10, %s3575_s10   ;;  %s3059_s9 = sphi %s3107_s9, %s3574_s9  }
   0x8   : > { %p29_p0 = scmp.ge.s32.totalorder %s28_s16, 2  ;;  %s40_s17 = sadd.s32 1, %s3067_s11 }
   0x9   : > { %p47_p1 = scmp.ne.s32.totalorder %s3067_s11, %s3063_s10  ;;  %p48_p2 = scmp.eq.s32.totalorder %s3079_s14, 0 }
   0xa   : > { %s3580_s16 = smov (%p29_p0, %s28_s16), 0  ;;  %p53_p4 = scmp.ne.s32.totalorder %s3063_s10, %s3059_s9 }
   0xb   : > { %p3143_p3 = por %p48_p2, %p47_p1  ;;  %s35_s19 = ssub.s32 %s3075_s13, %s3580_s16 }
   0xc   : > { %p54_p5 = scmp.eq.s32.totalorder %s2570_s15, 0  ;;  %p38_p6 = scmp.eq.s32.totalorder %s35_s19, 0 }
   0xd   : > { %p2851_p8 = scmp.lt.s32.totalorder %s3079_s14, 2  ;;  %s3161_s22 = sand.u32 1, %s3067_s11  }
   0xe   : > { %p3152_p7 = por %p54_p5, %p53_p4  ;;  %s2638_s23 = sshll.u32 %s3075_s13, 9 }
   0xf   : > { %s3158_s21 = scalar_select %p38_p6, %s3067_s11, %s40_s17  }
  0x10   : > { %s3569_s20 = scalar_select %p3152_p7, 1, 0 }
  0x11   : > { %s2573_s24 = sshll.u32 %s3161_s22, 5  ;;  %s3170_s27 = scalar_lea.hbm %s3564_s0, %s2638_s23 }
  0x12   : > { %s135_s28 = scalar_lea.vmem [#allocation2], %s2573_s24  ;;  %p3176_p9 = pnand %p2851_p8, %p3143_p3 }
  0x13   : > { %s143_s29 = sshll.u32 %s135_s28, 4  ;;  %s132_s3 = scalar_lea.sflag [#allocation3], %s3161_s22  ;;  %s3180_s29 = int_to_ptr.vmem [resolvable:$true] %s143_s29 }
  0x14   : > { %s2935_s4 = scalar_lea.hbm %s3170_s27, 512  ;;  %p2937_p11 = pneg %p3176_p9 }
  0x15   : > { %p2936_p10 = scmp.ne.s32.totalorder %s3170_s27, %s2935_s4  ;;  %s2940_s7 = scalar_lea.hbm %s3564_s0, 1024 }
  0x16   : > { %p2941_p0 = scmp.lt.u32.totalorder %s3170_s27, %s3564_s0  ;;  %p2942_p1 = scmp.lt.u32.totalorder %s2940_s7, %s2935_s4 }
  0x17   : > { %p2938_p12 = pnand %p2937_p11, %p2936_p10  ;;  %p2944_p3 = scmp.lt.u32.totalorder %s2935_s4, %s3170_s27 }
  0x18   : > { %p2943_p2 = por %p2942_p1, %p2941_p0 }
  0x19   : > { %p2939_p13 = pneg %p2938_p12 }
  0x1a   : > { %p2945_p4 = por %p2944_p3, %p2943_p2 }
  0x1c   : > { %p2946_p5 = pnand %p2945_p4, %p2939_p13 }
  0x1e   : > { %2949 = shalt.err (!%p2946_p5)
}
  0x1f   : > { %s2950_s17 = scalar_lea.vmem %s3180_s29, 512  ;;  %s3081_s18 = smov [#allocation2]  }
  0x20   : > { %p2951_p6 = scmp.ne.s32.totalorder %s3180_s29, %s2950_s17  ;;  %s2955_s19 = sshll.u32 %s3081_s18, 4  ;;  %s2956_s19 = int_to_ptr.vmem [resolvable:$false] %s2955_s19 }
  0x21   : > { %s2957_s25 = scalar_lea.vmem %s2956_s19, 1024  ;;  %p2958_p12 = scmp.lt.s32.totalorder %s3180_s29, %s2956_s19 }
  0x22   : > { %p2953_p8 = pnand %p2951_p6, %p2937_p11  ;;  %p2959_p0 = scmp.lt.s32.totalorder %s2957_s25, %s2950_s17 }
  0x24   : > { %p2954_p10 = pneg %p2953_p8  ;;  %p2960_p1 = por %p2959_p0, %p2958_p12 }
  0x26   : > { %p2961_p2 = pnand %p2960_p1, %p2954_p10 }
  0x28   : > { %2964 = shalt.err (!%p2961_p2)
}
  0x29   : > { %s3082_s26 = smov 128   ;;  %s3083_s28 = smov 8  }
  0x2a   : > { %2847 = dma.hbm_to_vmem [thread:$0]  (!%p3176_p9), %s3170_s27, 512, %s3180_s29, %s132_s3, %s3082_s26, %s3082_s26, %s3083_s28  }
  0x2b   : > { %p2579_p13 = scmp.ge.s32.totalorder %s3079_s14, 1  ;;  %p173_p3 = scmp.lt.s32.totalorder %s3079_s14, 3 }
  0x2c   : > { %s3224_s7 = scalar_lea.hbm %s3565_s1, %s2638_s23  ;;  %s157_s8 = scalar_lea.vmem [#allocation5], %s2573_s24 }
  0x2d   : > { %p3215_p4 = pnand %p2579_p13, %p173_p3  ;;  %s165_s9 = sshll.u32 %s157_s8, 4  ;;  %s3228_s9 = int_to_ptr.vmem [resolvable:$true] %s165_s9 }
  0x2e   : > { %s154_s27 = scalar_lea.sflag [#allocation6], %s3161_s22  ;;  %s2965_s29 = scalar_lea.hbm %s3224_s7, 512 }
  0x2f   : > { %p2966_p5 = scmp.ne.s32.totalorder %s3224_s7, %s2965_s29  ;;  %s2970_s23 = scalar_lea.hbm %s3565_s1, 1024 }
  0x30   : > { %p2971_p10 = scmp.lt.u32.totalorder %s3224_s7, %s3565_s1  ;;  %p2972_p12 = scmp.lt.u32.totalorder %s2970_s23, %s2965_s29 }
  0x31   : > { %p2968_p6 = pnand %p2966_p5, %p2937_p11  ;;  %p2974_p1 = scmp.lt.u32.totalorder %s2965_s29, %s3224_s7 }
  0x32   : > { %p2973_p0 = por %p2972_p12, %p2971_p10 }
  0x33   : > { %p2969_p8 = pneg %p2968_p6 }
  0x34   : > { %p2975_p2 = por %p2974_p1, %p2973_p0 }
  0x36   : > { %p2976_p13 = pnand %p2975_p2, %p2969_p8 }
  0x38   : > { %2979 = shalt.err (!%p2976_p13)
}
  0x39   : > { %s2980_s24 = scalar_lea.vmem %s3228_s9, 512  ;;  %s3084_s25 = smov [#allocation5]  }
  0x3a   : > { %p2981_p3 = scmp.ne.s32.totalorder %s3228_s9, %s2980_s24  ;;  %s2985_s5 = sshll.u32 %s3084_s25, 4  ;;  %s2986_s5 = int_to_ptr.vmem [resolvable:$false] %s2985_s5 }
  0x3b   : > { %s2987_s6 = scalar_lea.vmem %s2986_s5, 1024  ;;  %p2988_p7 = scmp.lt.s32.totalorder %s3228_s9, %s2986_s5 }
  0x3c   : > { %p2983_p5 = pnand %p2981_p3, %p2937_p11  ;;  %p2989_p10 = scmp.lt.s32.totalorder %s2987_s6, %s2980_s24 }
  0x3e   : > { %p2984_p6 = pneg %p2983_p5  ;;  %p2990_p12 = por %p2989_p10, %p2988_p7 }
  0x40   : > { %p2991_p0 = pnand %p2990_p12, %p2984_p6 }
  0x42   : > { %2994 = shalt.err (!%p2991_p0)
}
  0x43   : > { %2850 = dma.hbm_to_vmem [thread:$0]  (!%p3176_p9), %s3224_s7, 512, %s3228_s9, %s154_s27, %s3082_s26, %s3082_s26, %s3083_s28  }
  0x44   : > { %177 = sbr.rel (%p3215_p4) target bundleno = 434 (0x1b2), region = 28  ;;  %s179_s8 = sand.u32 (!%p3215_p4), 1, %s3063_s10  }
  0x45   : > { %s2580_s29 = sshll.u32 (!%p3215_p4), %s179_s8, 5  ;;  %s180_s3 = scalar_lea.sflag (!%p3215_p4), [#allocation3], %s179_s8 }
  0x46   : > { %s3262_s17 = scalar_lea.vmem (!%p3215_p4), [#allocation2], %s2580_s29  ;;  %p3572_p7 = scmp.ne.s32.totalorder (!%p3215_p4), %s3569_s20, 0 }
  0x4b   : > { %3046 = dma.done.wait (%p3572_p7), %s180_s3, 512  }
  0x4c   : > { %3048 = vsyncadd (%p3572_p7), %s180_s3, 4294966784  ;;  %s189_s22 = scalar_lea.sflag [#allocation6], %s179_s8  ;;  %s3268_s30 = scalar_lea.vmem [#allocation5], %s2580_s29 }
  0x4d   : > { %3050 = dma.done.wait (%p3572_p7), %s189_s22, 512  }
  0x4e   : > { %3052 = vsyncadd (%p3572_p7), %s189_s22, 4294966784  ;;  %p2582_p9 = scmp.ne.s32.totalorder %s3071_s12, 0 }
  0x4f   : > { %v3085_v0 = vmov (!%p2582_p9), 0.0  }
  0x50   : > { %216 = sbr.rel (%p2582_p9) target bundleno = 94 (0x5e), region = 40  ;;  %217 = vst [vmem:[#allocation7] sm:$0xff] (!%p2582_p9), %v3085_v0  ;;  %218 = vst [vmem:[#allocation7 + $0x8] sm:$0xff] (!%p2582_p9), %v3085_v0 }
  0x51   : > { %219 = vst [vmem:[#allocation7 + $0x10] sm:$0xff] (!%p2582_p9), %v3085_v0  ;;  %220 = vst [vmem:[#allocation7 + $0x18] sm:$0xff] (!%p2582_p9), %v3085_v0 }
  0x52   : > { %221 = vst [vmem:[#allocation7 + $0x20] sm:$0xff] (!%p2582_p9), %v3085_v0  ;;  %222 = vst [vmem:[#allocation7 + $0x28] sm:$0xff] (!%p2582_p9), %v3085_v0 }
  0x53   : > { %223 = vst [vmem:[#allocation7 + $0x30] sm:$0xff] (!%p2582_p9), %v3085_v0  ;;  %224 = vst [vmem:[#allocation7 + $0x38] sm:$0xff] (!%p2582_p9), %v3085_v0 }
  0x54   : > { %225 = vst [vmem:[#allocation7 + $0x40] sm:$0xff] (!%p2582_p9), %v3085_v0  ;;  %226 = vst [vmem:[#allocation7 + $0x48] sm:$0xff] (!%p2582_p9), %v3085_v0 }
  0x55   : > { %227 = vst [vmem:[#allocation7 + $0x50] sm:$0xff] (!%p2582_p9), %v3085_v0  ;;  %228 = vst [vmem:[#allocation7 + $0x58] sm:$0xff] (!%p2582_p9), %v3085_v0 }
  0x56   : > { %229 = vst [vmem:[#allocation7 + $0x60] sm:$0xff] (!%p2582_p9), %v3085_v0  ;;  %230 = vst [vmem:[#allocation7 + $0x68] sm:$0xff] (!%p2582_p9), %v3085_v0 }
  0x57   : > { %231 = vst [vmem:[#allocation7 + $0x70] sm:$0xff] %v3085_v0  ;;  %232 = vst [vmem:[#allocation7 + $0x78] sm:$0xff] %v3085_v0 }
  0x58   : > { %233 = vst [vmem:[#allocation7 + $0x80] sm:$0xff] %v3085_v0  ;;  %234 = vst [vmem:[#allocation7 + $0x88] sm:$0xff] %v3085_v0 }
  0x59   : > { %235 = vst [vmem:[#allocation7 + $0x90] sm:$0xff] %v3085_v0  ;;  %236 = vst [vmem:[#allocation7 + $0x98] sm:$0xff] %v3085_v0 }
  0x5a   : > { %237 = vst [vmem:[#allocation7 + $0xa0] sm:$0xff] %v3085_v0  ;;  %238 = vst [vmem:[#allocation7 + $0xa8] sm:$0xff] %v3085_v0 }
  0x5b   : > { %239 = vst [vmem:[#allocation7 + $0xb0] sm:$0xff] %v3085_v0  ;;  %240 = vst [vmem:[#allocation7 + $0xb8] sm:$0xff] %v3085_v0 }
  0x5c   : > { %241 = vst [vmem:[#allocation7 + $0xc0] sm:$0xff] %v3085_v0  ;;  %242 = vst [vmem:[#allocation7 + $0xc8] sm:$0xff] %v3085_v0 }
  0x5d   : > { %243 = vst [vmem:[#allocation7 + $0xd0] sm:$0xff] %v3085_v0  ;;  %244 = vst [vmem:[#allocation7 + $0xd8] sm:$0xff] %v3085_v0 }
  0x5e PF: > { %v253_v1 = vld [vmem:[%s3262_s17] sm:$0xff]  ;;  %v2595_v2 = vld [vmem:[%s3262_s17 + $0x8] sm:$0xff]  ;;  %v3086_v3 = vmov 0.0   ;;  %v2608_v5 = vld [vmem:[%s3262_s17 + $0x10] sm:$0xff]  ;;  %vm3087_vm0 = vmmov 0   ;;  %v245_v24 = vlaneseq  ;;  %vm284_vm3 = vcmask 64512  }
  0x5f   : > { %2696 = vmatprep.subr.mxu0 %v3086_v3  ;;  %2701 = vmatprep.subr.mxu1 %v3086_v3  ;;  %v255_v4 = vsub.f32 0.0, %v253_v1  ;;  %v812_v7 = vsub.f32 0.0, %v2595_v2  ;;  %v1366_v8 = vsub.f32 0.0, %v2608_v5  ;;  %v2621_v9 = vld [vmem:[%s3262_s17 + $0x18] sm:$0xff]  ;;  %v3286_v34 = vld [vmem:[%s3268_s30] sm:$0xff]  ;;  %v3291_v42 = vld [vmem:[%s3268_s30 + $0x8] sm:$0xff] }
  0x60   : > { %2698 = vmatprep.mubr.msk.f32.mxu0 %vm3087_vm0, %v3086_v3  ;;  %2703 = vmatprep.mubr.msk.f32.mxu1 %vm3087_vm0, %v3086_v3  ;;  %v1920_v14 = vsub.f32 0.0, %v2621_v9  ;;  %v246_v25 = vand.u32 127, %v245_v24  ;;  %v248_v29 = vshrl.u32 %v245_v24, 7  ;;  %vm264_vm2 = vcmp.eq.f32.partialorder %v3286_v34, 1.0  ;;  %v3315_v58 = vld [vmem:[%s3268_s30 + $0x10] sm:$0xff]  ;;  %s3089_s12 = smov [#allocation7]  }
  0x61   : > { %v256_v6 = vmin.f32 %v255_v4, 80.0  ;;  %v813_v11 = vmin.f32 %v812_v7, 80.0  ;;  %v1367_v12 = vmin.f32 %v1366_v8, 80.0  ;;  %vm821_vm4 = vcmp.eq.f32.partialorder %v3291_v42, 1.0  ;;  %s2479_s20 = sshll.u32 %s3089_s12, 4  ;;  %p3520_p11 = scmp.eq.s32.totalorder %s2570_s15, 1  ;;  %s2480_s20 = int_to_ptr.vmem [resolvable:$true] %s2479_s20 }
  0x62   : > { %v1921_v16 = vmin.f32 %v1920_v14, 80.0  ;;  %v249_v30 = vand.u32 7, %v246_v25  ;;  %vm1375_vm5 = vcmp.eq.f32.partialorder %v3315_v58, 1.0  ;;  %vm265_vm6 = vcmp.eq.f32.partialorder %v3286_v34, 0.0  ;;  %s2995_s28 = scalar_lea.vmem %s2480_s20, 3584  ;;  %p3002_p2 = scmp.lt.s32.totalorder %s2480_s20, %s2480_s20 }
  0x63   : > { %v257_v10 = vmul.f32 1.442695, %v256_v6  ;;  %v814_v13 = vmul.f32 1.442695, %v813_v11  ;;  %v1368_v15 = vmul.f32 1.442695, %v1367_v12  ;;  %p2996_p4 = scmp.ne.s32.totalorder %s2480_s20, %s2995_s28  ;;  %p3003_p13 = scmp.lt.s32.totalorder %s2995_s28, %s2995_s28 }
  0x64   : > { %v1922_v17 = vmul.f32 1.442695, %v1921_v16  ;;  %vm250_vm1 = vcmp.eq.s32.totalorder %v249_v30, %v248_v29  ;;  %v2584_v7 = vsel %vm264_vm2, 1.0, %v3086_v3  ;;  %v2585_v8 = vsel %vm265_vm6, 1.0, %v3086_v3 }
  0x65   : > { %2911 = vpow2.f32 %v257_v10  ;;  %v3294_v44 = vsel %vm250_vm1, 1.0, %v3086_v3  ;;  %vm822_vm8 = vcmp.eq.f32.partialorder %v3291_v42, 0.0  ;;  %vm1376_vm9 = vcmp.eq.f32.partialorder %v3315_v58, 0.0  ;;  %p2997_p8 = pnand %p2996_p4, %p3520_p11  ;;  %p3004_p3 = por %p3003_p13, %p3002_p2 }
  0x66   : > { %2913 = vpow2.f32 %v814_v13  ;;  %v2598_v30 = vsel %vm822_vm8, 1.0, %v3086_v3 }
  0x67   : > { %2915 = vpow2.f32 %v1368_v15  ;;  %p2998_p1 = pneg %p2997_p8 }
  0x68   : > { %2917 = vpow2.f32 %v1922_v17  ;;  %v3338_v17 = vld [vmem:[%s3268_s30 + $0x18] sm:$0xff] }
  0x69   : > { %vm1929_vm7 = vcmp.eq.f32.partialorder %v3338_v17, 1.0  ;;  %vm1930_vm10 = vcmp.eq.f32.partialorder %v3338_v17, 0.0  ;;  %p3005_p5 = pnand %p3004_p3, %p2998_p1 }
  0x6f   : > { %v2912_v18 = vpop.eup %2911 }
  0x70   : > { %v259_v19 = vadd.f32 1.0, %v2912_v18  ;;  %v2914_v20 = vpop.eup %2913 }
  0x71   : > { %v2916_v21 = vpop.eup %2915  ;;  %v816_v22 = vadd.f32 1.0, %v2914_v20 }
  0x72   : > { %2919 = vrcp.f32 %v259_v19  ;;  %v1370_v23 = vadd.f32 1.0, %v2916_v21  ;;  %v2918_v26 = vpop.eup %2917 }
  0x73   : > { %2921 = vrcp.f32 %v816_v22  ;;  %v1924_v32 = vadd.f32 1.0, %v2918_v26 }
  0x74   : > { %2923 = vrcp.f32 %v1370_v23 }
  0x75   : > { %2925 = vrcp.f32 %v1924_v32 }
  0x7c   : > { %v2920_v27 = vpop.eup %2919 }
  0x7d   : > { %v261_v28 = vmul.f32 %v2920_v27, %v259_v19  ;;  %v2922_v31 = vpop.eup %2921 }
  0x7e   : > { %v2924_v33 = vpop.eup %2923  ;;  %v818_v36 = vmul.f32 %v2922_v31, %v816_v22  ;;  %v3088_v22 = vmov 1.0  }
  0x7f   : > { %v262_v35 = vsub.f32 2.0, %v261_v28  ;;  %v1372_v37 = vmul.f32 %v2924_v33, %v1370_v23  ;;  %v2926_v59 = vpop.eup %2925  ;;  %v2597_v28 = vsel %vm821_vm4, 1.0, %v3086_v3 }
  0x80   : > { %v819_v39 = vsub.f32 2.0, %v818_v36  ;;  %v1926_v63 = vmul.f32 %v2926_v59, %v1924_v32 }
  0x81   : > { %v263_v38 = vmul.f32 %v2920_v27, %v262_v35  ;;  %v1373_v45 = vsub.f32 2.0, %v1372_v37 }
  0x82   : > { %v820_v43 = vmul.f32 %v2922_v31, %v819_v39  ;;  %v1927_v2 = vsub.f32 2.0, %v1926_v63  ;;  %v2624_v63 = vsel %vm1930_vm10, 1.0, %v3086_v3 }
  0x83   : > { %v279_v40 = vmul.f32 %v263_v38, %v3286_v34  ;;  %v270_v41 = vsub.f32 1.0, %v263_v38  ;;  %v3305_v56 = vmul.f32 %v2924_v33, %v1373_v45 }
  0x84   : > { %v827_v51 = vsub.f32 1.0, %v820_v43  ;;  %v836_v10 = vmul.f32 %v3291_v42, %v820_v43  ;;  %v3335_v12 = vmul.f32 %v2926_v59, %v1927_v2  ;;  %v283_v2 = vld [vmem:[#allocation7] sm:$0xff] }
  0x85   : > { %v282_v46 = vmul.f32 %v279_v40, %v279_v40  ;;  %v280_v47 = vsub.f32 %v263_v38, %v279_v40  ;;  %v281_v48 = vsub.f32 %v3286_v34, %v279_v40  ;;  %v271_v49 = vsel %vm264_vm2, %v263_v38, %v270_v41 }
  0x86   : > { %v272_v50 = vmax.f32 %v271_v49, 1e-06  ;;  %v828_v55 = vsel %vm821_vm4, %v820_v43, %v827_v51  ;;  %v1381_v61 = vsub.f32 1.0, %v3305_v56  ;;  %v837_v18 = vsub.f32 %v820_v43, %v836_v10 }
  0x87   : > { %2697 = vmatpush3.msra.mxu0 %v282_v46  ;;  %v360_v52 = vmul.f32 %v280_v47, %v280_v47  ;;  %v435_v53 = vmul.f32 %v281_v48, %v281_v48  ;;  %v829_v57 = vmax.f32 %v828_v55, 1e-06  ;;  %v1935_v21 = vsub.f32 1.0, %v3335_v12 }
  0x88   : > { %2699 = vmatmul.mubr.msk.f32.vlgmr.msra.gmra.mrb[0].mxu0 %vm284_vm3, %v3294_v44  ;;  %2706 = vmatprep.subr.mxu0 %v3086_v3  ;;  %v273_v54 = vmin.f32 %v272_v50, 0.999999  ;;  %v1382_v0 = vsel %vm1375_vm5, %v3305_v56, %v1381_v61  ;;  %v839_v23 = vmul.f32 %v836_v10, %v836_v10  ;;  %v838_v24 = vsub.f32 %v3291_v42, %v836_v10 }
  0x89   : > { %2702 = vmatpush3.msra.mxu1 %v360_v52  ;;  %2707 = vmatpush3.msra.mxu0 %v435_v53  ;;  %v830_v60 = vmin.f32 %v829_v57, 0.999999  ;;  %v1383_v5 = vmax.f32 %v1382_v0, 1e-06  ;;  %v914_v25 = vmul.f32 %v837_v18, %v837_v18  ;;  %v1936_v27 = vsel %vm1929_vm7, %v3335_v12, %v1935_v21 }
  0x8a   : > { %2704 = vmatmul.mubr.msk.f32.vlgmr.msra.gmra.mrb[0].mxu1 %vm284_vm3, %v3294_v44  ;;  %2711 = vmatprep.subr.mxu1 %v3086_v3  ;;  %2927 = vlog2.f32 %v273_v54  ;;  %v274_v62 = vsub.f32 1.0, %v273_v54  ;;  %v989_v29 = vmul.f32 %v838_v24, %v838_v24  ;;  %v1937_v31 = vmax.f32 %v1936_v27, 1e-06  ;;  %v841_v27 = vld [vmem:[#allocation7 + $0x8] sm:$0xff] }
  0x8b   : > { %2708 = vmatprep.mubr.msk.f32.mxu0 %vm3087_vm0, %v3086_v3  ;;  %2713 = vmatprep.mubr.msk.f32.mxu1 %vm3087_vm0, %v3086_v3  ;;  %2929 = vlog2.f32 %v830_v60  ;;  %v831_v11 = vsub.f32 1.0, %v830_v60  ;;  %v1384_v13 = vmin.f32 %v1383_v5, 0.999999  ;;  %v1390_v34 = vmul.f32 %v3315_v58, %v3305_v56  ;;  %v362_v5 = vld [vmem:[#allocation7 + $0x20] sm:$0xff] }
  0x8c   : > { %2709 = vmatmul.mubr.msk.f32.vlgmr.msra.gmra.mrb[2].mxu0 %vm284_vm3, %v3294_v44  ;;  %2716 = vmatprep.subr.mxu0 %v3086_v3  ;;  %v275_v1 = vmul.f32 %v274_v62, %v274_v62  ;;  %v1938_v37 = vmin.f32 %v1937_v31, 0.999999  ;;  %v2610_v47 = vsel %vm1375_vm5, 1.0, %v3086_v3  ;;  %v2611_v48 = vsel %vm1376_vm9, 1.0, %v3086_v3  ;;  %v916_v31 = vld [vmem:[#allocation7 + $0x28] sm:$0xff] }
  0x8d   : > { %2718 = vmatprep.mubr.msk.f32.mxu0 %vm3087_vm0, %v3086_v3  ;;  %v832_v19 = vmul.f32 %v831_v11, %v831_v11  ;;  %2931 = vlog2.f32 %v1384_v13  ;;  %v1385_v35 = vsub.f32 1.0, %v1384_v13  ;;  %v1391_v38 = vsub.f32 %v3305_v56, %v1390_v34 }
  0x8e   : > { %2933 = vlog2.f32 %v1938_v37  ;;  %v1393_v41 = vmul.f32 %v1390_v34, %v1390_v34  ;;  %v1392_v43 = vsub.f32 %v3315_v58, %v1390_v34  ;;  %v1944_v51 = vmul.f32 %v3338_v17, %v3335_v12 }
  0x8f   : > { %v1386_v39 = vmul.f32 %v1385_v35, %v1385_v35  ;;  %v1468_v45 = vmul.f32 %v1391_v38, %v1391_v38  ;;  %v1939_v52 = vsub.f32 1.0, %v1938_v37  ;;  %v2623_v62 = vsel %vm1929_vm7, 1.0, %v3086_v3  ;;  %v991_v35 = vld [vmem:[#allocation7 + $0x48] sm:$0xff] }
  0x90   : > { %v1543_v42 = vmul.f32 %v1392_v43, %v1392_v43  ;;  %v1945_v54 = vsub.f32 %v3335_v12, %v1944_v51  ;;  %v1947_v57 = vmul.f32 %v1944_v51, %v1944_v51  ;;  %v1946_v59 = vsub.f32 %v3338_v17, %v1944_v51 }
  0x91   : > { %v1940_v55 = vmul.f32 %v1939_v52, %v1939_v52  ;;  %v1289_v52 = vld [vmem:[#allocation7 + $0xc8] sm:$0xff] }
  0x92   : > { %v2022_v60 = vmul.f32 %v1945_v54, %v1945_v54  ;;  %v2097_v58 = vmul.f32 %v1946_v59, %v1946_v59 }
  0x94   : > { %v2928_v4 = vpop.eup %2927 }
  0x95   : > { %v277_v6 = vmul.f32 0.6931472, %v2928_v4  ;;  %v2930_v14 = vpop.eup %2929 }
  0x96   : > { %v834_v20 = vmul.f32 0.6931472, %v2930_v14  ;;  %v512_v14 = vld [vmem:[#allocation7 + $0x60] sm:$0xff] }
  0x97   : > { %v278_v9 = vmul.f32 %v277_v6, %v275_v1  ;;  %v2932_v36 = vpop.eup %2931 }
  0x98   : > { %v835_v26 = vmul.f32 %v834_v20, %v832_v19  ;;  %v1388_v40 = vmul.f32 0.6931472, %v2932_v36  ;;  %v2934_v53 = vpop.eup %2933  ;;  %v661_v19 = vld [vmem:[#allocation7 + $0xa0] sm:$0xff] }
  0x99   : > { %v510_v15 = vmul.f32 %v2584_v7, %v278_v9  ;;  %v585_v16 = vmul.f32 %v2585_v8, %v278_v9  ;;  %v1942_v56 = vmul.f32 0.6931472, %v2934_v53  ;;  %v437_v9 = vld [vmem:[#allocation7 + $0x40] sm:$0xff] }
  0x9a   : > { %v1064_v32 = vmul.f32 %v2597_v28, %v835_v26  ;;  %v1139_v33 = vmul.f32 %v2598_v30, %v835_v26  ;;  %v1389_v46 = vmul.f32 %v1388_v40, %v1386_v39  ;;  %v1066_v39 = vld [vmem:[#allocation7 + $0x68] sm:$0xff] }
  0x9b   : > { %2712 = vmatpush3.msra.mxu1 %v510_v15  ;;  %2717 = vmatpush3.msra.mxu0 %v585_v16  ;;  %v1943_v61 = vmul.f32 %v1942_v56, %v1940_v55  ;;  %v587_v16 = vld [vmem:[#allocation7 + $0x80] sm:$0xff]  ;;  %v1395_v56 = vld [vmem:[#allocation7 + $0x10] sm:$0xff] }
  0x9c   : > { %2714 = vmatmul.mubr.msk.f32.vlgmr.msra.gmra.mrb[2].mxu1 %vm284_vm3, %v3294_v44  ;;  %2721 = vmatprep.subr.mxu1 %v3086_v3  ;;  %v1618_v49 = vmul.f32 %v2610_v47, %v1389_v46  ;;  %v1693_v50 = vmul.f32 %v2611_v48, %v1389_v46  ;;  %v1215_v48 = vld [vmem:[#allocation7 + $0xa8] sm:$0xff] }
  0x9d   : > { %2722 = vmatpush3.msk.msra.mxu1 %vm264_vm2, %v3088_v22  ;;  %2723 = vmatprep.mubr.msk.f32.mxu1 %vm3087_vm0, %v3086_v3  ;;  %v2172_v0 = vmul.f32 %v2623_v62, %v1943_v61  ;;  %v2247_v1 = vmul.f32 %v2624_v63, %v1943_v61  ;;  %v1470_v61 = vld [vmem:[#allocation7 + $0x30] sm:$0xff] }
  0x9e   : > { %2719 = vmatmul.mubr.msk.f32.vlgmr.msra.gmra.mrb[4].mxu0 %vm284_vm3, %v3294_v44  ;;  %2726 = vmatprep.subr.mxu0 %v3086_v3 }
  0x9f   : > { %2731 = vmatprep.subr.mxu1 %v3086_v3  ;;  %2727 = vmatpush3.msk.msra.mxu0 %vm265_vm6, %v3088_v22 }
  0xa0   : > { %2724 = vmatmul.mubr.msk.f32.vlgmr.msra.gmra.mrb[4].mxu1 %vm284_vm3, %v3294_v44  ;;  %2728 = vmatprep.mubr.msk.f32.mxu0 %vm3087_vm0, %v3086_v3 }
  0xa1   : > { %2732 = vmatpush3.msra.mxu1 %v839_v23  ;;  %2733 = vmatprep.mubr.msk.f32.mxu1 %vm3087_vm0, %v3086_v3  ;;  %v735_v23 = vld [vmem:[#allocation7 + $0xc0] sm:$0xff] }
  0xa2   : > { %2729 = vmatmul.mubr.msk.f32.vlgmr.msra.gmra.mrb[6].mxu0 %vm284_vm3, %v3294_v44  ;;  %2736 = vmatprep.subr.mxu0 %v3086_v3 }
  0xa3   : > { %2741 = vmatprep.subr.mxu1 %v3086_v3  ;;  %2737 = vmatpush3.msra.mxu0 %v914_v25 }
  0xa4   : > { %2734 = vmatmul.mubr.msk.f32.vlgmr.msra.gmra.mrb[6].mxu1 %vm284_vm3, %v3294_v44  ;;  %2738 = vmatprep.mubr.msk.f32.mxu0 %vm3087_vm0, %v3086_v3 }
  0xa5   : > { %2742 = vmatpush3.msra.mxu1 %v989_v29  ;;  %2743 = vmatprep.mubr.msk.f32.mxu1 %vm3087_vm0, %v3086_v3 }
  0xa6   : > { %2739 = vmatmul.mubr.msk.f32.vlgmr.msra.gmra.mrb[8].mxu0 %vm284_vm3, %v3294_v44  ;;  %2746 = vmatprep.subr.mxu0 %v3086_v3 }
  0xa7   : > { %2751 = vmatprep.subr.mxu1 %v3086_v3  ;;  %2747 = vmatpush3.msra.mxu0 %v1064_v32 }
  0xa8   : > { %2744 = vmatmul.mubr.msk.f32.vlgmr.msra.gmra.mrb[8].mxu1 %vm284_vm3, %v3294_v44  ;;  %2748 = vmatprep.mubr.msk.f32.mxu0 %vm3087_vm0, %v3086_v3 }
  0xa9   : > { %2752 = vmatpush3.msra.mxu1 %v1139_v33  ;;  %2753 = vmatprep.mubr.msk.f32.mxu1 %vm3087_vm0, %v3086_v3 }
  0xaa   : > { %2749 = vmatmul.mubr.msk.f32.vlgmr.msra.gmra.mrb[10].mxu0 %vm284_vm3, %v3294_v44  ;;  %2756 = vmatprep.subr.mxu0 %v3086_v3 }
  0xab   : > { %2761 = vmatprep.subr.mxu1 %v3086_v3  ;;  %2757 = vmatpush3.msk.msra.mxu0 %vm821_vm4, %v3088_v22 }
  0xac   : > { %2754 = vmatmul.mubr.msk.f32.vlgmr.msra.gmra.mrb[10].mxu1 %vm284_vm3, %v3294_v44  ;;  %2758 = vmatprep.mubr.msk.f32.mxu0 %vm3087_vm0, %v3086_v3 }
  0xad   : > { %2762 = vmatpush3.msk.msra.mxu1 %vm822_vm8, %v3088_v22  ;;  %2763 = vmatprep.mubr.msk.f32.mxu1 %vm3087_vm0, %v3086_v3 }
  0xae   : > { %2759 = vmatmul.mubr.msk.f32.vlgmr.msra.gmra.mrb[12].mxu0 %vm284_vm3, %v3294_v44  ;;  %2766 = vmatprep.subr.mxu0 %v3086_v3 }
  0xaf   : > { %2771 = vmatprep.subr.mxu1 %v3086_v3  ;;  %2767 = vmatpush3.msra.mxu0 %v1393_v41 }
  0xb0   : > { %2764 = vmatmul.mubr.msk.f32.vlgmr.msra.gmra.mrb[12].mxu1 %vm284_vm3, %v3294_v44  ;;  %2768 = vmatprep.mubr.msk.f32.mxu0 %vm3087_vm0, %v3086_v3 }
  0xb1   : > { %2772 = vmatpush3.msra.mxu1 %v1468_v45  ;;  %2773 = vmatprep.mubr.msk.f32.mxu1 %vm3087_vm0, %v3086_v3  ;;  %v1141_v45 = vld [vmem:[#allocation7 + $0x88] sm:$0xff] }
  0xb2   : > { %2769 = vmatmul.mubr.msk.f32.vlgmr.msra.gmra.mrb[14].mxu0 %vm284_vm3, %v3294_v44  ;;  %2776 = vmatprep.subr.mxu0 %v3086_v3 }
  0xb3   : > { %2781 = vmatprep.subr.mxu1 %v3086_v3  ;;  %2777 = vmatpush3.msra.mxu0 %v1543_v42 }
  0xb4   : > { %2774 = vmatmul.mubr.msk.f32.vlgmr.msra.gmra.mrb[14].mxu1 %vm284_vm3, %v3294_v44  ;;  %2778 = vmatprep.mubr.msk.f32.mxu0 %vm3087_vm0, %v3086_v3 }
  0xb5   : > { %2782 = vmatpush3.msra.mxu1 %v1618_v49  ;;  %2783 = vmatprep.mubr.msk.f32.mxu1 %vm3087_vm0, %v3086_v3 }
  0xb6   : > { %2779 = vmatmul.mubr.msk.f32.vlgmr.msra.gmra.mrb[16].mxu0 %vm284_vm3, %v3294_v44  ;;  %2786 = vmatprep.subr.mxu0 %v3086_v3 }
  0xb7   : > { %2791 = vmatprep.subr.mxu1 %v3086_v3  ;;  %2787 = vmatpush3.msra.mxu0 %v1693_v50 }
  0xb8   : > { %2784 = vmatmul.mubr.msk.f32.vlgmr.msra.gmra.mrb[16].mxu1 %vm284_vm3, %v3294_v44  ;;  %2788 = vmatprep.mubr.msk.f32.mxu0 %vm3087_vm0, %v3086_v3 }
  0xb9   : > { %2792 = vmatpush3.msk.msra.mxu1 %vm1375_vm5, %v3088_v22  ;;  %2793 = vmatprep.mubr.msk.f32.mxu1 %vm3087_vm0, %v3086_v3 }
  0xba   : > { %2789 = vmatmul.mubr.msk.f32.vlgmr.msra.gmra.mrb[18].mxu0 %vm284_vm3, %v3294_v44  ;;  %2796 = vmatprep.subr.mxu0 %v3086_v3 }
  0xbb   : > { %2801 = vmatprep.subr.mxu1 %v3086_v3  ;;  %2797 = vmatpush3.msk.msra.mxu0 %vm1376_vm9, %v3088_v22 }
  0xbc   : > { %2794 = vmatmul.mubr.msk.f32.vlgmr.msra.gmra.mrb[18].mxu1 %vm284_vm3, %v3294_v44  ;;  %2798 = vmatprep.mubr.msk.f32.mxu0 %vm3087_vm0, %v3086_v3 }
  0xbd   : > { %2802 = vmatpush3.msra.mxu1 %v1947_v57  ;;  %2803 = vmatprep.mubr.msk.f32.mxu1 %vm3087_vm0, %v3086_v3 }
  0xbe   : > { %2799 = vmatmul.mubr.msk.f32.vlgmr.msra.gmra.mrb[20].mxu0 %vm284_vm3, %v3294_v44  ;;  %2806 = vmatprep.subr.mxu0 %v3086_v3 }
  0xbf   : > { %2811 = vmatprep.subr.mxu1 %v3086_v3  ;;  %2807 = vmatpush3.msra.mxu0 %v2022_v60 }
  0xc0   : > { %2804 = vmatmul.mubr.msk.f32.vlgmr.msra.gmra.mrb[20].mxu1 %vm284_vm3, %v3294_v44  ;;  %2808 = vmatprep.mubr.msk.f32.mxu0 %vm3087_vm0, %v3086_v3 }
  0xc1   : > { %2812 = vmatpush3.msra.mxu1 %v2097_v58  ;;  %2813 = vmatprep.mubr.msk.f32.mxu1 %vm3087_vm0, %v3086_v3 }
  0xc2   : > { %2809 = vmatmul.mubr.msk.f32.vlgmr.msra.gmra.mrb[22].mxu0 %vm284_vm3, %v3294_v44  ;;  %2816 = vmatprep.subr.mxu0 %v3086_v3 }
  0xc3   : > { %2821 = vmatprep.subr.mxu1 %v3086_v3  ;;  %2817 = vmatpush3.msra.mxu0 %v2172_v0  ;;  %v1545_v0 = vld [vmem:[#allocation7 + $0x50] sm:$0xff] }
  0xc4   : > { %2814 = vmatmul.mubr.msk.f32.vlgmr.msra.gmra.mrb[22].mxu1 %vm284_vm3, %v3294_v44  ;;  %2818 = vmatprep.mubr.msk.f32.mxu0 %vm3087_vm0, %v3086_v3 }
  0xc5   : > { %2822 = vmatpush3.msra.mxu1 %v2247_v1  ;;  %2823 = vmatprep.mubr.msk.f32.mxu1 %vm3087_vm0, %v3086_v3 }
  0xc6   : > { %2819 = vmatmul.mubr.msk.f32.vlgmr.msra.gmra.mrb[24].mxu0 %vm284_vm3, %v3294_v44  ;;  %2826 = vmatprep.subr.mxu0 %v3086_v3 }
  0xc7   : > { %2831 = vmatprep.subr.mxu1 %v3086_v3  ;;  %2827 = vmatpush3.msk.msra.mxu0 %vm1929_vm7, %v3088_v22 }
  0xc8   : > { %2824 = vmatmul.mubr.msk.f32.vlgmr.msra.gmra.mrb[24].mxu1 %vm284_vm3, %v3294_v44  ;;  %2828 = vmatprep.mubr.msk.f32.mxu0 %vm3087_vm0, %v3086_v3 }
  0xc9   : > { %2832 = vmatpush3.msk.msra.mxu1 %vm1930_vm10, %v3088_v22  ;;  %2833 = vmatprep.mubr.msk.f32.mxu1 %vm3087_vm0, %v3086_v3 }
  0xca   : > { %2829 = vmatmul.mubr.msk.f32.vlgmr.msra.gmra.mrb[26].mxu0 %vm284_vm3, %v3294_v44 }
  0xcc   : > { %2834 = vmatmul.mubr.msk.f32.vlgmr.msra.gmra.mrb[26].mxu1 %vm284_vm3, %v3294_v44 }
 0x15b   : > { %v354_v4 = vpop.f32.mrb[0].mxu0 }
 0x15c   : > { %v358_v6 = vadd.f32 %v354_v4, %v283_v2  ;;  %v2700_v7 = vpop.f32.mrb[1].mxu0 }
 0x15d   : > { %v429_v8 = vpop.f32.mrb[0].mxu1 }
 0x15e   : > { %359 = vst [vmem:[#allocation7] sm:$0xff] %v358_v6  ;;  %v433_v10 = vadd.f32 %v429_v8, %v362_v5  ;;  %v2705_v11 = vpop.f32.mrb[1].mxu1  ;;  %v1620_v5 = vld [vmem:[#allocation7 + $0x70] sm:$0xff] }
 0x15f   : > { %v504_v12 = vpop.f32.mrb[2].mxu0 }
 0x160   : > { %434 = vst [vmem:[#allocation7 + $0x20] sm:$0xff] %v433_v10  ;;  %v508_v13 = vadd.f32 %v504_v12, %v437_v9  ;;  %v2710_v3 = vpop.f32.mrb[3].mxu0  ;;  %v1695_v9 = vld [vmem:[#allocation7 + $0x90] sm:$0xff] }
 0x162   : > { %509 = vst [vmem:[#allocation7 + $0x40] sm:$0xff] %v508_v13  ;;  %v1769_v13 = vld [vmem:[#allocation7 + $0xb0] sm:$0xff] }
 0x16f   : > { %v579_v15 = vpop.f32.mrb[2].mxu1 }
 0x170   : > { %v583_v17 = vadd.f32 %v579_v15, %v512_v14  ;;  %v2715_v44 = vpop.f32.mrb[3].mxu1 }
 0x171   : > { %v654_v18 = vpop.f32.mrb[4].mxu0 }
 0x172   : > { %584 = vst [vmem:[#allocation7 + $0x60] sm:$0xff] %v583_v17  ;;  %v658_v20 = vadd.f32 %v654_v18, %v587_v16  ;;  %v2720_v21 = vpop.f32.mrb[5].mxu0  ;;  %v1843_v16 = vld [vmem:[#allocation7 + $0xd0] sm:$0xff] }
 0x173   : > { %v728_v22 = vpop.f32.mrb[4].mxu1 }
 0x174   : > { %659 = vst [vmem:[#allocation7 + $0x80] sm:$0xff] %v658_v20  ;;  %v732_v24 = vadd.f32 %v728_v22, %v661_v19  ;;  %v2725_v25 = vpop.f32.mrb[5].mxu1  ;;  %v1949_v19 = vld [vmem:[#allocation7 + $0x18] sm:$0xff] }
 0x175   : > { %v802_v26 = vpop.f32.mrb[6].mxu0 }
 0x176   : > { %733 = vst [vmem:[#allocation7 + $0xa0] sm:$0xff] %v732_v24  ;;  %v806_v28 = vadd.f32 %v802_v26, %v735_v23  ;;  %v2730_v29 = vpop.f32.mrb[7].mxu0  ;;  %v2024_v23 = vld [vmem:[#allocation7 + $0x38] sm:$0xff] }
 0x177   : > { %v908_v30 = vpop.f32.mrb[6].mxu1 }
 0x178   : > { %807 = vst [vmem:[#allocation7 + $0xc0] sm:$0xff] %v806_v28  ;;  %v912_v32 = vadd.f32 %v908_v30, %v841_v27  ;;  %v2735_v33 = vpop.f32.mrb[7].mxu1  ;;  %v2099_v27 = vld [vmem:[#allocation7 + $0x58] sm:$0xff] }
 0x179   : > { %v983_v34 = vpop.f32.mrb[8].mxu0 }
 0x17a   : > { %913 = vst [vmem:[#allocation7 + $0x8] sm:$0xff] %v912_v32  ;;  %v987_v36 = vadd.f32 %v983_v34, %v916_v31  ;;  %v2740_v37 = vpop.f32.mrb[9].mxu0  ;;  %v2174_v31 = vld [vmem:[#allocation7 + $0x78] sm:$0xff] }
 0x17b   : > { %v1058_v38 = vpop.f32.mrb[8].mxu1 }
 0x17c   : > { %988 = vst [vmem:[#allocation7 + $0x28] sm:$0xff] %v987_v36  ;;  %v1062_v40 = vadd.f32 %v1058_v38, %v991_v35  ;;  %v2745_v41 = vpop.f32.mrb[9].mxu1  ;;  %v2249_v35 = vld [vmem:[#allocation7 + $0x98] sm:$0xff] }
 0x17d   : > { %v1133_v43 = vpop.f32.mrb[10].mxu0 }
 0x17e   : > { %1063 = vst [vmem:[#allocation7 + $0x48] sm:$0xff] %v1062_v40  ;;  %v1137_v46 = vadd.f32 %v1133_v43, %v1066_v39  ;;  %v2750_v47 = vpop.f32.mrb[11].mxu0  ;;  %v2323_v39 = vld [vmem:[#allocation7 + $0xb8] sm:$0xff] }
 0x17f   : > { %v1208_v42 = vpop.f32.mrb[10].mxu1 }
 0x180   : > { %1138 = vst [vmem:[#allocation7 + $0x68] sm:$0xff] %v1137_v46  ;;  %v1212_v49 = vadd.f32 %v1208_v42, %v1141_v45  ;;  %v2755_v50 = vpop.f32.mrb[11].mxu1  ;;  %v2397_v45 = vld [vmem:[#allocation7 + $0xd8] sm:$0xff] }
 0x181   : > { %v1282_v51 = vpop.f32.mrb[12].mxu0 }
 0x182   : > { %1213 = vst [vmem:[#allocation7 + $0x88] sm:$0xff] %v1212_v49  ;;  %v1286_v53 = vadd.f32 %v1282_v51, %v1215_v48  ;;  %v2760_v54 = vpop.f32.mrb[13].mxu0 }
 0x183   : > { %v1356_v55 = vpop.f32.mrb[12].mxu1 }
 0x184   : > { %1287 = vst [vmem:[#allocation7 + $0xa8] sm:$0xff] %v1286_v53  ;;  %v1360_v57 = vadd.f32 %v1356_v55, %v1289_v52  ;;  %v2765_v59 = vpop.f32.mrb[13].mxu1 }
 0x185   : > { %v1462_v60 = vpop.f32.mrb[14].mxu0 }
 0x186   : > { %1361 = vst [vmem:[#allocation7 + $0xc8] sm:$0xff] %v1360_v57  ;;  %v1466_v62 = vadd.f32 %v1462_v60, %v1395_v56  ;;  %v2770_v58 = vpop.f32.mrb[15].mxu0 }
 0x187   : > { %v1537_v63 = vpop.f32.mrb[14].mxu1 }
 0x188   : > { %1467 = vst [vmem:[#allocation7 + $0x10] sm:$0xff] %v1466_v62  ;;  %v1541_v1 = vadd.f32 %v1537_v63, %v1470_v61  ;;  %v2775_v2 = vpop.f32.mrb[15].mxu1 }
 0x189   : > { %v1612_v4 = vpop.f32.mrb[16].mxu0 }
 0x18a   : > { %1542 = vst [vmem:[#allocation7 + $0x30] sm:$0xff] %v1541_v1  ;;  %v1616_v6 = vadd.f32 %v1612_v4, %v1545_v0  ;;  %v2780_v7 = vpop.f32.mrb[17].mxu0 }
 0x18b   : > { %v1687_v8 = vpop.f32.mrb[16].mxu1 }
 0x18c   : > { %1617 = vst [vmem:[#allocation7 + $0x50] sm:$0xff] %v1616_v6  ;;  %v1691_v10 = vadd.f32 %v1687_v8, %v1620_v5  ;;  %v2785_v11 = vpop.f32.mrb[17].mxu1 }
 0x18d   : > { %v1762_v12 = vpop.f32.mrb[18].mxu0 }
 0x18e   : > { %1692 = vst [vmem:[#allocation7 + $0x70] sm:$0xff] %v1691_v10  ;;  %v1766_v3 = vadd.f32 %v1762_v12, %v1695_v9  ;;  %v2790_v14 = vpop.f32.mrb[19].mxu0 }
 0x18f   : > { %v1836_v15 = vpop.f32.mrb[18].mxu1 }
 0x190   : > { %1767 = vst [vmem:[#allocation7 + $0x90] sm:$0xff] %v1766_v3  ;;  %v1840_v17 = vadd.f32 %v1836_v15, %v1769_v13  ;;  %v2795_v44 = vpop.f32.mrb[19].mxu1 }
 0x191   : > { %v1910_v18 = vpop.f32.mrb[20].mxu0 }
 0x192   : > { %1841 = vst [vmem:[#allocation7 + $0xb0] sm:$0xff] %v1840_v17  ;;  %v1914_v20 = vadd.f32 %v1910_v18, %v1843_v16  ;;  %v2800_v21 = vpop.f32.mrb[21].mxu0 }
 0x193   : > { %v2016_v22 = vpop.f32.mrb[20].mxu1 }
 0x194   : > { %1915 = vst [vmem:[#allocation7 + $0xd0] sm:$0xff] %v1914_v20  ;;  %v2020_v24 = vadd.f32 %v2016_v22, %v1949_v19  ;;  %v2805_v25 = vpop.f32.mrb[21].mxu1 }
 0x195   : > { %v2091_v26 = vpop.f32.mrb[22].mxu0 }
 0x196   : > { %2021 = vst [vmem:[#allocation7 + $0x18] sm:$0xff] %v2020_v24  ;;  %v2095_v28 = vadd.f32 %v2091_v26, %v2024_v23  ;;  %v2810_v29 = vpop.f32.mrb[23].mxu0 }
 0x197   : > { %v2166_v30 = vpop.f32.mrb[22].mxu1 }
 0x198   : > { %2096 = vst [vmem:[#allocation7 + $0x38] sm:$0xff] %v2095_v28  ;;  %v2170_v32 = vadd.f32 %v2166_v30, %v2099_v27  ;;  %v2815_v33 = vpop.f32.mrb[23].mxu1 }
 0x199   : > { %v2241_v34 = vpop.f32.mrb[24].mxu0 }
 0x19a   : > { %2171 = vst [vmem:[#allocation7 + $0x58] sm:$0xff] %v2170_v32  ;;  %v2245_v36 = vadd.f32 %v2241_v34, %v2174_v31  ;;  %v2820_v37 = vpop.f32.mrb[25].mxu0 }
 0x19b   : > { %v2316_v38 = vpop.f32.mrb[24].mxu1 }
 0x19c   : > { %2246 = vst [vmem:[#allocation7 + $0x78] sm:$0xff] %v2245_v36  ;;  %v2320_v40 = vadd.f32 %v2316_v38, %v2249_v35  ;;  %v2825_v41 = vpop.f32.mrb[25].mxu1 }
 0x19d   : > { %v2390_v43 = vpop.f32.mrb[26].mxu0 }
 0x19e   : > { %2321 = vst [vmem:[#allocation7 + $0x98] sm:$0xff] %v2320_v40  ;;  %v2394_v46 = vadd.f32 %v2390_v43, %v2323_v39  ;;  %v2830_v47 = vpop.f32.mrb[27].mxu0 }
 0x19f   : > { %v2464_v42 = vpop.f32.mrb[26].mxu1 }
 0x1a0   : > { %2395 = vst [vmem:[#allocation7 + $0xb8] sm:$0xff] %v2394_v46  ;;  %v2468_v48 = vadd.f32 %v2464_v42, %v2397_v45  ;;  %v2835_v49 = vpop.f32.mrb[27].mxu1 }
 0x1a2   : > { %2469 = vst [vmem:[#allocation7 + $0xd8] sm:$0xff] %v2468_v48 }
 0x1a3   : > { %3008 = shalt.err (!%p3005_p5)
}
 0x1a4   : > { %s3009_s7 = scalar_lea.hbm %s3566_s2, 3584 }
 0x1a5   : > { %p3010_p6 = scmp.ne.s32.totalorder %s3566_s2, %s3009_s7  ;;  %p3015_p0 = scmp.lt.u32.totalorder %s3009_s7, %s3566_s2 }
 0x1a7   : > { %p3011_p10 = pnand %p3010_p6, %p3520_p11 }
 0x1a9   : > { %p3012_p12 = pneg %p3011_p10 }
 0x1ab   : > { %p3017_p7 = pnand %p3015_p0, %p3012_p12 }
 0x1ad   : > { %3020 = shalt.err (!%p3017_p7)
}
 0x1ae   : > { %s3090_s19 = smov 128   ;;  %s3091_s24 = smov 8  }
 0x1af   : > { %2841 = dma.vmem_to_hbm [thread:$0]  (%p3520_p11), %s2480_s20, 3584, %s3566_s2, [#allocation4], %s3090_s19, %s3090_s19, %s3091_s24  }
 0x1b0   : > { %3054 = dma.done.wait (%p3520_p11), [#allocation4], 3584  }
 0x1b1   : > { %3056 = vsyncadd (%p3520_p11), [#allocation4], 4294963712 }
 0x1b2 PF: > { %s19_s14 = sadd.s32 1, %s3079_s14   ;;  %s3574_s9 = smov %s3063_s10 }
 0x1b3   : > { %p16_p9 = scmp.ge.s32.totalorder %s19_s14, 4   ;;  %s3575_s10 = smov %s3067_s11 }
 0x1b4   : > { %s3576_s11 = smov %s3158_s21  ;;  %s3577_s12 = smov %s3075_s13 }
 0x1b5   : > { %s3578_s13 = smov %s3580_s16  ;;  %18 = sbr.rel (!%p16_p9) target bundleno = 7 (0x7), region = 116 }
 0x1bc   :  { %2495 = vsyncpa [#allocation3], 1 }
 0x1bd   :  { %2497 = vsyncpa [#allocation3 + $0x1], 1 }
 0x1be   :  { %2498 = vsyncpa [#allocation6], 1 }
 0x1bf   :  { %2500 = vsyncpa [#allocation6 + $0x1], 1 }
 0x1c0   :  { %2501 = vsyncpa [#allocation4], 1 }
 0x1c1   :  { %2503 = vsyncpa [#allocation4 + $0x1], 1 }

</bundles_post_ra>
